<compile_context>
chip_gen: v7x
topology: tpu7x:2x2x1
jax: 0.10.0
libtpu: 0.0.40
codegen_flags: <defaults>
</compile_context>

<pallas_src>
import functools
import math

import jax
import jax.numpy as jnp
from jax import lax
from jax.experimental import pallas as pl
from jax.experimental.pallas import tpu as pltpu


def _round_up(v, m):
    return ((v + m - 1) // m) * m


# ----------------------------------------------------------------------------
# Fused RK4 kernel (NB images folded on sublanes per grid step)
# ----------------------------------------------------------------------------
def _rk4_kernel(t_ref, x_ref, w_ref, b_ref, m_ref, o_ref, yt_ref, *,
                Wp, LSEG, PADL):
    # t_ref : (T,)            SMEM  time points (only t[0], t[1] used)
    # x_ref : (1, SP, LTOT)   VMEM  padded, row-flattened y0 (batch on sublanes)
    # w_ref : (SP, 9*SP)      VMEM  block-diagonal conv-tap weight slab
    # b_ref : (SP, 1)         VMEM  bias (tiled over the folded batch)
    # m_ref : (1, LSEG)       VMEM  1.0 at valid pixels, 0.0 at halo/pad columns
    # o_ref : (1, SP, LOUT)   VMEM  y1 slab (lane-dense, LOUT = ceil128(LSEG))
    # yt_ref: (SP, LTOT)      VMEM  scratch for intermediate RK4 states
    SP, LTOT = yt_ref.shape
    LOUT = o_ref.shape[2]

    dt = t_ref[1] - t_ref[0]                     # f32 scalar (SMEM)
    w2d = w_ref[...]                             # loaded once, resident
    bias = b_ref[...]
    mask = m_ref[...]

    # Zero only the slice margins of the scratch; the interior window is
    # always (mask-)rewritten before it is read.
    yt_ref[:, :PADL] = jnp.zeros((SP, PADL), jnp.float32)
    yt_ref[:, PADL + LSEG:] = jnp.zeros((SP, LTOT - PADL - LSEG), jnp.float32)

    y0_full = x_ref[0]                           # (SP, LTOT) value, zero halos
    y0_core = y0_full[:, PADL:PADL + LSEG]       # (SP, LSEG)

    def odefunc(buf):
        # buf: (SP, LTOT) VALUE with zero halos/margins.
        # 9 shifted tap slices (value slices, no VMEM round trips), stacked on
        # sublanes (each piece SP % 8 == 0 rows -> tile-aligned concat), then
        # ONE (SP, 9*SP) x (9*SP, LSEG) MXU matmul instead of 9 tiny K=C dots.
        taps = []
        for kh in range(3):
            for kw in range(3):
                s = PADL + (kh - 1) * Wp + (kw - 1)       # static lane offset
                taps.append(buf[:, s:s + LSEG])
        rhs = jnp.concatenate(taps, axis=0)               # (9*SP, LSEG)
        acc = lax.dot_general(w2d, rhs, (((1,), (0,)), ((), ())),
                              preferred_element_type=jnp.float32)
        return jnp.tanh(acc + bias)                       # (SP, LSEG)

    def next_eval(k, coef):
        # One bulk store + one bulk load per eval; the mask keeps halo
        # rows/cols (and padded batch rows) at zero for the next eval's taps.
        yt_ref[:, PADL:PADL + LSEG] = mask * (y0_core + coef * k)
        return odefunc(yt_ref[...])

    # Classical RK4 over [t0, t1]; k1..k4 stay in vregs.
    k1 = odefunc(y0_full)
    k2 = next_eval(k1, 0.5 * dt)
    k3 = next_eval(k2, 0.5 * dt)
    k4 = next_eval(k3, dt)

    y1 = mask * (y0_core + (dt / 6.0) * (k1 + 2.0 * (k2 + k3) + k4))
    if LOUT > LSEG:                                       # lane-dense store
        y1 = jnp.concatenate(
            [y1, jnp.zeros((SP, LOUT - LSEG), jnp.float32)], axis=1)
    o_ref[0] = y1.astype(o_ref.dtype)


# ----------------------------------------------------------------------------
# Wrapper: layout prep (once per call) + pallas_call + un-padding
# ----------------------------------------------------------------------------
@jax.jit
def _rk4_step(x, times, w_tap9, bias):
    N, C, H, W = x.shape
    Hp, Wp = H + 2, W + 2
    LSEG = Hp * Wp                   # per-image padded-flat window (incl. halo)
    MROW = 2                         # margin rows; 2*Wp >= Wp+1 covers all taps
    PADL = MROW * Wp                 # slice headroom on both sides
    LTOT = PADL + LSEG + PADL
    LOUT = _round_up(LSEG, 128)      # lane-dense output slab width

    # Batch folding: all images on the sublane axis of one grid step for small
    # batches; split into 2 parallel steps when the batch allows so both v7x
    # TensorCores get work (harmless serial 2-step loop on v5e/v6e).
    NG = 2 if (N % 2 == 0 and N >= 4) else 1
    NB = N // NG
    S = NB * C
    SP = _round_up(max(S, 8), 8)     # sublane rows padded to a multiple of 8

    # --- y0 layout: ONE pad builds the 1-pixel halo AND the flat margins -----
    xf = x.astype(jnp.float32)
    xpad = jnp.pad(xf, ((0, 0), (0, 0), (1 + MROW, 1 + MROW), (1, 1)))
    xbuf = xpad.reshape(NG, S, LTOT)              # rows ordered (image, channel)
    if SP > S:
        xbuf = jnp.pad(xbuf, ((0, 0), (0, SP - S), (0, 0)))

    # --- valid-pixel mask over the flattened padded window -------------------
    f = jnp.arange(LSEG, dtype=jnp.int32)
    r, c = f // Wp, f % Wp
    mask = ((r >= 1) & (r <= H) & (c >= 1) & (c <= W)).astype(
        jnp.float32).reshape(1, LSEG)

    # --- block-diagonal weight slab: one matmul covers all folded images -----
    eye = jnp.eye(NB, dtype=jnp.float32)
    lhs = jnp.einsum("ab,toi->aotbi", eye, w_tap9).reshape(S, 9, S)
    if SP > S:
        lhs = jnp.zeros((SP, 9, SP), jnp.float32).at[:S, :, :S].set(lhs)
    lhs = lhs.reshape(SP, 9 * SP)

    bias_col = jnp.tile(bias, (NB,))
    if SP > S:
        bias_col = jnp.pad(bias_col, (0, SP - S))
    bias_col = bias_col.reshape(SP, 1)

    kern = functools.partial(_rk4_kernel, Wp=Wp, LSEG=LSEG, PADL=PADL)
    out = pl.pallas_call(
        kern,
        out_shape=jax.ShapeDtypeStruct((NG, SP, LOUT), x.dtype),
        grid=(NG,),
        in_specs=[
            pl.BlockSpec(memory_space=pltpu.MemorySpace.SMEM),        # times
            pl.BlockSpec((1, SP, LTOT), lambda g: (g, 0, 0)),         # y0 slab
            pl.BlockSpec((SP, 9 * SP), lambda g: (0, 0)),             # weights
            pl.BlockSpec((SP, 1), lambda g: (0, 0)),                  # bias
            pl.BlockSpec((1, LSEG), lambda g: (0, 0)),                # mask
        ],
        out_specs=pl.BlockSpec((1, SP, LOUT), lambda g: (g, 0, 0)),
        scratch_shapes=[pltpu.VMEM((SP, LTOT), jnp.float32)],
        compiler_params=pltpu.CompilerParams(
            dimension_semantics=("parallel",)),
    )(times.astype(jnp.float32), xbuf, lhs, bias_col, mask)

    # Un-pad: lane-dense slab -> (N, C, H, W).  dtype already x.dtype (cast
    # happened inside the kernel).
    out = out[:, :S, :LSEG].reshape(N, C, Hp, Wp)
    return out[:, :, 1:H + 1, 1:W + 1]


# ----------------------------------------------------------------------------
# Module
# ----------------------------------------------------------------------------
class ODEBlockTimeMiddle:
    """ODE Block for middle time segments (Pallas/TPU version)."""

    def __init__(self, num_channels, num_split=2, solver="rk4", seed=0):
        self.num_split = num_split
        self.solver = solver
        key = jax.random.PRNGKey(seed)
        kw_key, kb_key = jax.random.split(key)
        fan_in = num_channels * 9
        bound = 1.0 / math.sqrt(fan_in)
        # PyTorch conv layout OIHW for reference; kernel uses (9, Cout, Cin).
        self.w_oihw = jax.random.uniform(
            kw_key, (num_channels, num_channels, 3, 3),
            minval=-bound, maxval=bound, dtype=jnp.float32)
        self.w_tap9 = jnp.transpose(self.w_oihw, (2, 3, 0, 1)).reshape(
            9, num_channels, num_channels)
        self.bias = jax.random.uniform(
            kb_key, (num_channels,), minval=-bound, maxval=bound,
            dtype=jnp.float32)

    def forward(self, x, t1, t2):
        odetime_1_tensor = jnp.concatenate(list(t1), axis=0)
        odetime_2_tensor = jnp.concatenate(list(t2), axis=0)
        all_time = jnp.concatenate(
            [odetime_1_tensor, odetime_2_tensor], axis=0)
        # odeint(..., t=all_time)[1] == one RK4 step from t[0] to t[1].
        return _rk4_step(x, all_time.astype(jnp.float32), self.w_tap9,
                         self.bias)

    __call__ = forward


# ----------------------------------------------------------------------------
# Plain-JAX reference (sanity check)
# ----------------------------------------------------------------------------
def _ref_forward(block, x_nchw, t1, t2):
    all_time = jnp.concatenate(
        [jnp.concatenate(list(t1)), jnp.concatenate(list(t2))]).astype(
            jnp.float32)
    w_hwio = jnp.transpose(block.w_oihw, (2, 3, 1, 0))
    b = block.bias

    def f(y):
        out = lax.conv_general_dilated(
            y, w_hwio, (1, 1), "SAME",
            dimension_numbers=("NCHW", "HWIO", "NCHW"),
            precision=lax.Precision.HIGHEST)
        return jnp.tanh(out + b[None, :, None, None])

    y0 = x_nchw.astype(jnp.float32)
    dt = all_time[1] - all_time[0]
    k1 = f(y0)
    k2 = f(y0 + dt * 0.5 * k1)
    k3 = f(y0 + dt * 0.5 * k2)
    k4 = f(y0 + dt * k3)
    return y0 + (dt / 6.0) * (k1 + 2.0 * k2 + 2.0 * k3 + k4)


if __name__ == "__main__":
    key = jax.random.PRNGKey(0)

    N, C, H, W = 2, 4, 16, 16
    x = jax.random.normal(key, (N, C, H, W), dtype=jnp.float32)

    # Middle-segment time points (lists of 1-D tensors, as in the PyTorch call).
    t1 = [jnp.array([0.0], jnp.float32), jnp.array([0.25], jnp.float32)]
    t2 = [jnp.array([0.5], jnp.float32), jnp.array([1.0], jnp.float32)]

    block = ODEBlockTimeMiddle(num_channels=C, num_split=2, solver="rk4", seed=0)

    out = jax.block_until_ready(block(x, t1, t2))
    ref = jax.block_until_ready(_ref_forward(block, x, t1, t2))

    assert out.shape == (N, C, H, W)
    max_err = float(jnp.max(jnp.abs(out - ref)))
    assert jnp.allclose(out, ref, atol=1e-4, rtol=1e-4), max_err

    print("KERNEL_OK")
</pallas_src>

<mosaic_0001>
module attributes {stable_mosaic.version = 11 : i64} {
  func.func @_rk4_kernel(%arg0: i32, %arg1: memref<4xf32, #tpu.memory_space<smem>>, %arg2: memref<1x8x396xf32, #tpu.memory_space<vmem>>, %arg3: memref<8x72xf32, #tpu.memory_space<vmem>>, %arg4: memref<8x1xf32, #tpu.memory_space<vmem>>, %arg5: memref<1x324xf32, #tpu.memory_space<vmem>>, %arg6: memref<1x8x384xf32, #tpu.memory_space<vmem>>, %arg7: memref<8x396xf32, #tpu.memory_space<vmem>>) attributes {dimension_semantics = [#tpu.dimension_semantics<parallel>], iteration_bounds = array<i64: 1>, scalar_prefetch = 0 : i64, scratch_operands = 1 : i64, tpu.core_type = #tpu.core_type<tc>, window_params = [{transform_indices = @transform_0, window_bounds = array<i64: 4>}, {transform_indices = @transform_1, window_bounds = array<i64: 1, 8, 396>}, {pipeline_mode = #tpu.pipeline_mode<synchronous>, transform_indices = @transform_2, window_bounds = array<i64: 8, 72>}, {pipeline_mode = #tpu.pipeline_mode<synchronous>, transform_indices = @transform_3, window_bounds = array<i64: 8, 1>}, {pipeline_mode = #tpu.pipeline_mode<synchronous>, transform_indices = @transform_4, window_bounds = array<i64: 1, 324>}, {transform_indices = @transform_5, window_bounds = array<i64: 1, 8, 384>}]} {
    %c1 = arith.constant 1 : index
    %0 = memref.load %arg1[%c1] : memref<4xf32, #tpu.memory_space<smem>>
    %c0 = arith.constant 0 : index
    %1 = memref.load %arg1[%c0] : memref<4xf32, #tpu.memory_space<smem>>
    %2 = arith.subf %0, %1 : f32
    %c0_0 = arith.constant 0 : index
    %c0_1 = arith.constant 0 : index
    %3 = vector.load %arg3[%c0_0, %c0_1] : memref<8x72xf32, #tpu.memory_space<vmem>>, vector<8x72xf32>
    %c0_2 = arith.constant 0 : index
    %c0_3 = arith.constant 0 : index
    %4 = vector.load %arg4[%c0_2, %c0_3] : memref<8x1xf32, #tpu.memory_space<vmem>>, vector<8x1xf32>
    %c0_4 = arith.constant 0 : index
    %c0_5 = arith.constant 0 : index
    %5 = vector.load %arg5[%c0_4, %c0_5] : memref<1x324xf32, #tpu.memory_space<vmem>>, vector<1x324xf32>
    %cst = arith.constant 0.000000e+00 : f32
    %6 = vector.broadcast %cst : f32 to vector<8x36xf32>
    %c0_6 = arith.constant 0 : index
    %c0_7 = arith.constant 0 : index
    %7 = vector.load %arg7[%c0_6, %c0_7] : memref<8x396xf32, #tpu.memory_space<vmem>>, vector<8x36xf32>
    tpu.vector_store %arg7[%c0_6, %c0_7], %6 {strides = array<i32>} : memref<8x396xf32, #tpu.memory_space<vmem>>, vector<8x36xf32>,
    %cst_8 = arith.constant 0.000000e+00 : f32
    %8 = vector.broadcast %cst_8 : f32 to vector<8x36xf32>
    %c0_9 = arith.constant 0 : index
    %c360 = arith.constant 360 : index
    %9 = vector.load %arg7[%c0_9, %c360] : memref<8x396xf32, #tpu.memory_space<vmem>>, vector<8x36xf32>
    tpu.vector_store %arg7[%c0_9, %c360], %8 {strides = array<i32>} : memref<8x396xf32, #tpu.memory_space<vmem>>, vector<8x36xf32>,
    %c0_10 = arith.constant 0 : index
    %c0_11 = arith.constant 0 : index
    %c0_12 = arith.constant 0 : index
    %10 = vector.load %arg2[%c0_10, %c0_11, %c0_12] : memref<1x8x396xf32, #tpu.memory_space<vmem>>, vector<1x8x396xf32>
    %11 = vector.shape_cast %10 : vector<1x8x396xf32> to vector<8x396xf32>
    %12 = vector.extract_strided_slice %11 {offsets = [0, 36], sizes = [8, 324], strides = [1, 1]} : vector<8x396xf32> to vector<8x324xf32>
    %13 = vector.extract_strided_slice %11 {offsets = [0, 17], sizes = [8, 324], strides = [1, 1]} : vector<8x396xf32> to vector<8x324xf32>
    %14 = vector.extract_strided_slice %11 {offsets = [0, 18], sizes = [8, 324], strides = [1, 1]} : vector<8x396xf32> to vector<8x324xf32>
    %15 = vector.extract_strided_slice %11 {offsets = [0, 19], sizes = [8, 324], strides = [1, 1]} : vector<8x396xf32> to vector<8x324xf32>
    %16 = vector.extract_strided_slice %11 {offsets = [0, 35], sizes = [8, 324], strides = [1, 1]} : vector<8x396xf32> to vector<8x324xf32>
    %17 = vector.extract_strided_slice %11 {offsets = [0, 36], sizes = [8, 324], strides = [1, 1]} : vector<8x396xf32> to vector<8x324xf32>
    %18 = vector.extract_strided_slice %11 {offsets = [0, 37], sizes = [8, 324], strides = [1, 1]} : vector<8x396xf32> to vector<8x324xf32>
    %19 = vector.extract_strided_slice %11 {offsets = [0, 53], sizes = [8, 324], strides = [1, 1]} : vector<8x396xf32> to vector<8x324xf32>
    %20 = vector.extract_strided_slice %11 {offsets = [0, 54], sizes = [8, 324], strides = [1, 1]} : vector<8x396xf32> to vector<8x324xf32>
    %21 = vector.extract_strided_slice %11 {offsets = [0, 55], sizes = [8, 324], strides = [1, 1]} : vector<8x396xf32> to vector<8x324xf32>
    %22 = tpu.concatenate %13, %14, %15, %16, %17, %18, %19, %20, %21 in 0 : vector<8x324xf32>, vector<8x324xf32>, vector<8x324xf32>, vector<8x324xf32>, vector<8x324xf32>, vector<8x324xf32>, vector<8x324xf32>, vector<8x324xf32>, vector<8x324xf32> -> vector<72x324xf32>
    %cst_13 = arith.constant dense<0.000000e+00> : vector<8x324xf32>
    %23 = tpu.matmul %3, %22, %cst_13 {dimension_numbers = #tpu.dot_dimension_numbers<[1], [0], [0], [1], [0, 0, 1, 1], [], []>} : vector<8x72xf32>, vector<72x324xf32>, vector<8x324xf32> -> vector<8x324xf32>
    %24 = vector.broadcast %4 : vector<8x1xf32> to vector<8x324xf32>
    %25 = arith.addf %23, %24 : vector<8x324xf32>
    %26 = math.tanh %25 : vector<8x324xf32>
    %cst_14 = arith.constant 5.000000e-01 : f32
    %27 = arith.mulf %cst_14, %2 : f32
    %28 = vector.broadcast %27 : f32 to vector<8x324xf32>
    %29 = arith.mulf %28, %26 : vector<8x324xf32>
    %30 = arith.addf %12, %29 : vector<8x324xf32>
    %31 = vector.broadcast %5 : vector<1x324xf32> to vector<8x324xf32>
    %32 = arith.mulf %31, %30 : vector<8x324xf32>
    %c0_15 = arith.constant 0 : index
    %c36 = arith.constant 36 : index
    %33 = vector.load %arg7[%c0_15, %c36] : memref<8x396xf32, #tpu.memory_space<vmem>>, vector<8x324xf32>
    tpu.vector_store %arg7[%c0_15, %c36], %32 {strides = array<i32>} : memref<8x396xf32, #tpu.memory_space<vmem>>, vector<8x324xf32>,
    %c0_16 = arith.constant 0 : index
    %c0_17 = arith.constant 0 : index
    %34 = vector.load %arg7[%c0_16, %c0_17] : memref<8x396xf32, #tpu.memory_space<vmem>>, vector<8x396xf32>
    %35 = vector.extract_strided_slice %34 {offsets = [0, 17], sizes = [8, 324], strides = [1, 1]} : vector<8x396xf32> to vector<8x324xf32>
    %36 = vector.extract_strided_slice %34 {offsets = [0, 18], sizes = [8, 324], strides = [1, 1]} : vector<8x396xf32> to vector<8x324xf32>
    %37 = vector.extract_strided_slice %34 {offsets = [0, 19], sizes = [8, 324], strides = [1, 1]} : vector<8x396xf32> to vector<8x324xf32>
    %38 = vector.extract_strided_slice %34 {offsets = [0, 35], sizes = [8, 324], strides = [1, 1]} : vector<8x396xf32> to vector<8x324xf32>
    %39 = vector.extract_strided_slice %34 {offsets = [0, 36], sizes = [8, 324], strides = [1, 1]} : vector<8x396xf32> to vector<8x324xf32>
    %40 = vector.extract_strided_slice %34 {offsets = [0, 37], sizes = [8, 324], strides = [1, 1]} : vector<8x396xf32> to vector<8x324xf32>
    %41 = vector.extract_strided_slice %34 {offsets = [0, 53], sizes = [8, 324], strides = [1, 1]} : vector<8x396xf32> to vector<8x324xf32>
    %42 = vector.extract_strided_slice %34 {offsets = [0, 54], sizes = [8, 324], strides = [1, 1]} : vector<8x396xf32> to vector<8x324xf32>
    %43 = vector.extract_strided_slice %34 {offsets = [0, 55], sizes = [8, 324], strides = [1, 1]} : vector<8x396xf32> to vector<8x324xf32>
    %44 = tpu.concatenate %35, %36, %37, %38, %39, %40, %41, %42, %43 in 0 : vector<8x324xf32>, vector<8x324xf32>, vector<8x324xf32>, vector<8x324xf32>, vector<8x324xf32>, vector<8x324xf32>, vector<8x324xf32>, vector<8x324xf32>, vector<8x324xf32> -> vector<72x324xf32>
    %cst_18 = arith.constant dense<0.000000e+00> : vector<8x324xf32>
    %45 = tpu.matmul %3, %44, %cst_18 {dimension_numbers = #tpu.dot_dimension_numbers<[1], [0], [0], [1], [0, 0, 1, 1], [], []>} : vector<8x72xf32>, vector<72x324xf32>, vector<8x324xf32> -> vector<8x324xf32>
    %46 = vector.broadcast %4 : vector<8x1xf32> to vector<8x324xf32>
    %47 = arith.addf %45, %46 : vector<8x324xf32>
    %48 = math.tanh %47 : vector<8x324xf32>
    %cst_19 = arith.constant 5.000000e-01 : f32
    %49 = arith.mulf %cst_19, %2 : f32
    %50 = vector.broadcast %49 : f32 to vector<8x324xf32>
    %51 = arith.mulf %50, %48 : vector<8x324xf32>
    %52 = arith.addf %12, %51 : vector<8x324xf32>
    %53 = vector.broadcast %5 : vector<1x324xf32> to vector<8x324xf32>
    %54 = arith.mulf %53, %52 : vector<8x324xf32>
    %c0_20 = arith.constant 0 : index
    %c36_21 = arith.constant 36 : index
    %55 = vector.load %arg7[%c0_20, %c36_21] : memref<8x396xf32, #tpu.memory_space<vmem>>, vector<8x324xf32>
    tpu.vector_store %arg7[%c0_20, %c36_21], %54 {strides = array<i32>} : memref<8x396xf32, #tpu.memory_space<vmem>>, vector<8x324xf32>,
    %c0_22 = arith.constant 0 : index
    %c0_23 = arith.constant 0 : index
    %56 = vector.load %arg7[%c0_22, %c0_23] : memref<8x396xf32, #tpu.memory_space<vmem>>, vector<8x396xf32>
    %57 = vector.extract_strided_slice %56 {offsets = [0, 17], sizes = [8, 324], strides = [1, 1]} : vector<8x396xf32> to vector<8x324xf32>
    %58 = vector.extract_strided_slice %56 {offsets = [0, 18], sizes = [8, 324], strides = [1, 1]} : vector<8x396xf32> to vector<8x324xf32>
    %59 = vector.extract_strided_slice %56 {offsets = [0, 19], sizes = [8, 324], strides = [1, 1]} : vector<8x396xf32> to vector<8x324xf32>
    %60 = vector.extract_strided_slice %56 {offsets = [0, 35], sizes = [8, 324], strides = [1, 1]} : vector<8x396xf32> to vector<8x324xf32>
    %61 = vector.extract_strided_slice %56 {offsets = [0, 36], sizes = [8, 324], strides = [1, 1]} : vector<8x396xf32> to vector<8x324xf32>
    %62 = vector.extract_strided_slice %56 {offsets = [0, 37], sizes = [8, 324], strides = [1, 1]} : vector<8x396xf32> to vector<8x324xf32>
    %63 = vector.extract_strided_slice %56 {offsets = [0, 53], sizes = [8, 324], strides = [1, 1]} : vector<8x396xf32> to vector<8x324xf32>
    %64 = vector.extract_strided_slice %56 {offsets = [0, 54], sizes = [8, 324], strides = [1, 1]} : vector<8x396xf32> to vector<8x324xf32>
    %65 = vector.extract_strided_slice %56 {offsets = [0, 55], sizes = [8, 324], strides = [1, 1]} : vector<8x396xf32> to vector<8x324xf32>
    %66 = tpu.concatenate %57, %58, %59, %60, %61, %62, %63, %64, %65 in 0 : vector<8x324xf32>, vector<8x324xf32>, vector<8x324xf32>, vector<8x324xf32>, vector<8x324xf32>, vector<8x324xf32>, vector<8x324xf32>, vector<8x324xf32>, vector<8x324xf32> -> vector<72x324xf32>
    %cst_24 = arith.constant dense<0.000000e+00> : vector<8x324xf32>
    %67 = tpu.matmul %3, %66, %cst_24 {dimension_numbers = #tpu.dot_dimension_numbers<[1], [0], [0], [1], [0, 0, 1, 1], [], []>} : vector<8x72xf32>, vector<72x324xf32>, vector<8x324xf32> -> vector<8x324xf32>
    %68 = vector.broadcast %4 : vector<8x1xf32> to vector<8x324xf32>
    %69 = arith.addf %67, %68 : vector<8x324xf32>
    %70 = math.tanh %69 : vector<8x324xf32>
    %71 = vector.broadcast %2 : f32 to vector<8x324xf32>
    %72 = arith.mulf %71, %70 : vector<8x324xf32>
    %73 = arith.addf %12, %72 : vector<8x324xf32>
    %74 = vector.broadcast %5 : vector<1x324xf32> to vector<8x324xf32>
    %75 = arith.mulf %74, %73 : vector<8x324xf32>
    %c0_25 = arith.constant 0 : index
    %c36_26 = arith.constant 36 : index
    %76 = vector.load %arg7[%c0_25, %c36_26] : memref<8x396xf32, #tpu.memory_space<vmem>>, vector<8x324xf32>
    tpu.vector_store %arg7[%c0_25, %c36_26], %75 {strides = array<i32>} : memref<8x396xf32, #tpu.memory_space<vmem>>, vector<8x324xf32>,
    %c0_27 = arith.constant 0 : index
    %c0_28 = arith.constant 0 : index
    %77 = vector.load %arg7[%c0_27, %c0_28] : memref<8x396xf32, #tpu.memory_space<vmem>>, vector<8x396xf32>
    %78 = vector.extract_strided_slice %77 {offsets = [0, 17], sizes = [8, 324], strides = [1, 1]} : vector<8x396xf32> to vector<8x324xf32>
    %79 = vector.extract_strided_slice %77 {offsets = [0, 18], sizes = [8, 324], strides = [1, 1]} : vector<8x396xf32> to vector<8x324xf32>
    %80 = vector.extract_strided_slice %77 {offsets = [0, 19], sizes = [8, 324], strides = [1, 1]} : vector<8x396xf32> to vector<8x324xf32>
    %81 = vector.extract_strided_slice %77 {offsets = [0, 35], sizes = [8, 324], strides = [1, 1]} : vector<8x396xf32> to vector<8x324xf32>
    %82 = vector.extract_strided_slice %77 {offsets = [0, 36], sizes = [8, 324], strides = [1, 1]} : vector<8x396xf32> to vector<8x324xf32>
    %83 = vector.extract_strided_slice %77 {offsets = [0, 37], sizes = [8, 324], strides = [1, 1]} : vector<8x396xf32> to vector<8x324xf32>
    %84 = vector.extract_strided_slice %77 {offsets = [0, 53], sizes = [8, 324], strides = [1, 1]} : vector<8x396xf32> to vector<8x324xf32>
    %85 = vector.extract_strided_slice %77 {offsets = [0, 54], sizes = [8, 324], strides = [1, 1]} : vector<8x396xf32> to vector<8x324xf32>
    %86 = vector.extract_strided_slice %77 {offsets = [0, 55], sizes = [8, 324], strides = [1, 1]} : vector<8x396xf32> to vector<8x324xf32>
    %87 = tpu.concatenate %78, %79, %80, %81, %82, %83, %84, %85, %86 in 0 : vector<8x324xf32>, vector<8x324xf32>, vector<8x324xf32>, vector<8x324xf32>, vector<8x324xf32>, vector<8x324xf32>, vector<8x324xf32>, vector<8x324xf32>, vector<8x324xf32> -> vector<72x324xf32>
    %cst_29 = arith.constant dense<0.000000e+00> : vector<8x324xf32>
    %88 = tpu.matmul %3, %87, %cst_29 {dimension_numbers = #tpu.dot_dimension_numbers<[1], [0], [0], [1], [0, 0, 1, 1], [], []>} : vector<8x72xf32>, vector<72x324xf32>, vector<8x324xf32> -> vector<8x324xf32>
    %89 = vector.broadcast %4 : vector<8x1xf32> to vector<8x324xf32>
    %90 = arith.addf %88, %89 : vector<8x324xf32>
    %91 = math.tanh %90 : vector<8x324xf32>
    %cst_30 = arith.constant 6.000000e+00 : f32
    %92 = arith.divf %2, %cst_30 : f32
    %93 = arith.addf %48, %70 : vector<8x324xf32>
    %cst_31 = arith.constant 2.000000e+00 : f32
    %94 = vector.broadcast %cst_31 : f32 to vector<8x324xf32>
    %95 = arith.mulf %94, %93 : vector<8x324xf32>
    %96 = arith.addf %26, %95 : vector<8x324xf32>
    %97 = arith.addf %96, %91 : vector<8x324xf32>
    %98 = vector.broadcast %92 : f32 to vector<8x324xf32>
    %99 = arith.mulf %98, %97 : vector<8x324xf32>
    %100 = arith.addf %12, %99 : vector<8x324xf32>
    %101 = vector.broadcast %5 : vector<1x324xf32> to vector<8x324xf32>
    %102 = arith.mulf %101, %100 : vector<8x324xf32>
    %cst_32 = arith.constant 0.000000e+00 : f32
    %103 = vector.broadcast %cst_32 : f32 to vector<8x60xf32>
    %104 = tpu.concatenate %102, %103 in 1 : vector<8x324xf32>, vector<8x60xf32> -> vector<8x384xf32>
    %c0_33 = arith.constant 0 : index
    %c0_34 = arith.constant 0 : index
    %c0_35 = arith.constant 0 : index
    %105 = vector.load %arg6[%c0_33, %c0_34, %c0_35] : memref<1x8x384xf32, #tpu.memory_space<vmem>>, vector<1x8x384xf32>
    %106 = vector.shape_cast %105 : vector<1x8x384xf32> to vector<8x384xf32>
    %107 = vector.shape_cast %104 : vector<8x384xf32> to vector<1x8x384xf32>
    tpu.vector_store %arg6[%c0_33, %c0_34, %c0_35], %107 {strides = array<i32>} : memref<1x8x384xf32, #tpu.memory_space<vmem>>, vector<1x8x384xf32>,
    return
  }
  func.func @transform_0(%arg0: i32) -> i32 {
    %c0_i32 = arith.constant 0 : i32
    %c0_i32_0 = arith.constant 0 : i32
    return %c0_i32 : i32
  }
  func.func @transform_1(%arg0: i32) -> (i32, i32, i32) {
    %c0_i32 = arith.constant 0 : i32
    %c0_i32_0 = arith.constant 0 : i32
    %c0_i32_1 = arith.constant 0 : i32
    return %arg0, %c0_i32, %c0_i32_0 : i32, i32, i32
  }
  func.func @transform_2(%arg0: i32) -> (i32, i32) {
    %c0_i32 = arith.constant 0 : i32
    %c0_i32_0 = arith.constant 0 : i32
    %c0_i32_1 = arith.constant 0 : i32
    return %c0_i32, %c0_i32_0 : i32, i32
  }
  func.func @transform_3(%arg0: i32) -> (i32, i32) {
    %c0_i32 = arith.constant 0 : i32
    %c0_i32_0 = arith.constant 0 : i32
    %c0_i32_1 = arith.constant 0 : i32
    return %c0_i32, %c0_i32_0 : i32, i32
  }
  func.func @transform_4(%arg0: i32) -> (i32, i32) {
    %c0_i32 = arith.constant 0 : i32
    %c0_i32_0 = arith.constant 0 : i32
    %c0_i32_1 = arith.constant 0 : i32
    return %c0_i32, %c0_i32_0 : i32, i32
  }
  func.func @transform_5(%arg0: i32) -> (i32, i32, i32) {
    %c0_i32 = arith.constant 0 : i32
    %c0_i32_0 = arith.constant 0 : i32
    %c0_i32_1 = arith.constant 0 : i32
    return %arg0, %c0_i32, %c0_i32_0 : i32, i32, i32
  }
}

</mosaic_0001>

<bundles_post_ra>
// kernel: tile.8
= control target key start
LH: loop header
LB: loop body
LE: loop exit
PB: predicated region body
PF: predicated region fallthrough
CT: control target
= control target key end

     0   :  { %s22_s0 = inlined_call_operand.vmem [shape: f32[4], index: 0, kind: input, shape index: {}]   ;;  %s23_s1 = inlined_call_operand.vmem [shape: f32[2,4], index: 1, kind: output, shape index: {}]  }
   0x1   :  { %v4_v0 = vld [vmem:[%s22_s0] ss:$0 sm:$0xff] }
   0x2   :  { %5 = vst [vmem:[%s23_s1] sm:$0x3] %v4_v0 }

// kernel: tile.0
= control target key start
LH: loop header
LB: loop body
LE: loop exit
PB: predicated region body
PF: predicated region fallthrough
CT: control target
= control target key end

     0   :  { %s34_s8 = smov 125   ;;  %vm7_vm0 = vcmask 7168   ;;  %s35_s11 = smov 126   ;;  %s61_s0 = inlined_call_operand.vmem [shape: f32[2,4], index: 0, kind: input, shape index: {}]   ;;  %s62_s1 = inlined_call_operand.vmem [shape: f32[8,1], index: 1, kind: output, shape index: {}]  }
   0x1   :  { %v4_v0 = vld [vmem:[%s61_s0] sm:$0x3]  ;;  %s33_s0 = smov 127  }
   0x2   :  { %5 = vst [vmem:[#allocation0] sm:$0x3] %v4_v0 }
   0x9   :  { %v9_v1 = vld [vmem:[#allocation0] sm:$0x3]  }
   0xa   :  { %v21_v2 = vld [vmem:[#allocation0] sm:$0x3]   ;;  %10 = vrot.lane.b32.xlu0 %v9_v1, %s33_s0 }
   0xb   :  { %22 = vrot.lane.b32.xlu1 %v21_v2, %s34_s8  ;;  %v6_v3 = vld [vmem:[#allocation0] sm:$0x3]  }
   0xc   :  { %v15_v4 = vld [vmem:[#allocation0] sm:$0x3]   ;;  %8 = vst.msk [vmem:[%s62_s1] ss:$4 sm:$0x3] %vm7_vm0, %v6_v3  }
   0xe   :  { %16 = vrot.lane.b32.xlu0 %v15_v4, %s35_s11 }
  0x7c   :  { %v11_v5 = vpop.permute.xlu0 %10  }
  0x7d   :  { %v23_v6 = vpop.permute.xlu1 %22   ;;  %27 = vst.msk [vmem:[%s62_s1 + $0x1] ss:$4 sm:$0x3] %vm7_vm0, %v11_v5  }
  0x7e   :  { %29 = vst.msk [vmem:[%s62_s1 + $0x3] ss:$4 sm:$0x3] %vm7_vm0, %v23_v6  }
  0x80   :  { %v17_v7 = vpop.permute.xlu0 %16  }
  0x81   :  { %28 = vst.msk [vmem:[%s62_s1 + $0x2] ss:$4 sm:$0x3] %vm7_vm0, %v17_v7  }

// kernel: _rk4_step.1
= control target key start
LH: loop header
LB: loop body
LE: loop exit
PB: predicated region body
PF: predicated region fallthrough
CT: control target
= control target key end

     0   :  { %10 = vsyncpa [#allocation4], 0  ;;  %s2825_s0 = inlined_call_operand.vmem [shape: f32[4], index: 0, kind: input, shape index: {}]   ;;  %s2826_s1 = inlined_call_operand.vmem [shape: f32[1,8,396], index: 1, kind: input, shape index: {}]   ;;  %s2827_s2 = inlined_call_operand.vmem [shape: f32[8,72], index: 2, kind: input, shape index: {}]   ;;  %s2828_s3 = inlined_call_operand.vmem [shape: f32[8,1], index: 3, kind: input, shape index: {}]   ;;  %s2829_s4 = inlined_call_operand.vmem [shape: f32[1,324], index: 4, kind: input, shape index: {}]   ;;  %s2830_s5 = inlined_call_operand.vmem [shape: f32[1,8,384], index: 5, kind: output, shape index: {}]  }
   0x1   :  { %s17_s20 = sshll.u32 %s2825_s0, 4  ;;  %s18_s20 = int_to_ptr.vmem [resolvable:$true] %s17_s20 }
   0x2   :  { %s2230_s21 = scalar_lea.vmem %s18_s20, 16  ;;  %p2235_p1 = scmp.lt.s32.totalorder %s18_s20, %s18_s20 }
   0x3   :  { %p2231_p0 = scmp.ne.s32.totalorder %s18_s20, %s2230_s21  ;;  %p2236_p2 = scmp.lt.s32.totalorder %s2230_s21, %s2230_s21 }
   0x5   :  { %p2237_p3 = por %p2236_p2, %p2235_p1 }
   0x7   :  { %p2238_p4 = pnand %p2237_p3, %p2231_p0 }
   0x9   :  { %2241 = shalt.err (!%p2238_p4)
}
   0xa   :  { %s2244_s22 = smov [#allocation3]  }
   0xb   :  { %20 = dma.vmem_to_smem %s18_s20, 16, %s2244_s22, [#allocation4]  }
   0xc   :  { %2242 = dma.done.wait [#allocation4], 16  }
   0xd   :  { %2243 = vsyncadd [#allocation4], 4294967280 }
   0xe   :  { %32 = sfence }
   0xf   :  { %v2295_v0 = vld [vmem:[%s2826_s1 + $0x8] sm:$0xff]  ;;  %v2300_v1 = vld [vmem:[%s2826_s1 + $0x10] sm:$0xff]  ;;  %s2245_s26 = smov 126   ;;  %s2246_s27 = smov 127   ;;  %v2309_v3 = vld [vmem:[%s2826_s1] sm:$0xff]  ;;  %v2254_v4 = vmov 0.0|0.0  }
  0x10   :  { %v1826_v2 = vpack.i.bf16 %v2300_v1, %v2295_v0  ;;  %s2247_s30 = smov 110   ;;  %s2248_s6 = smov 108   ;;  %1710 = vmatprep.subr.bf16.mxu1 %v2254_v4  ;;  %vm57_vm0 = vcmask 1039360   ;;  %vm66_vm1 = vcmask 1031168   ;;  %vm75_vm2 = vcmask 900096  }
  0x11   :  { %s2249_s7 = smov 109   ;;  %s2250_s8 = smov 91   ;;  %vm93_vm3 = vcmask 883712   ;;  %vm84_vm4 = vcmask 891904   ;;  %vm111_vm5 = vcmask 744448   ;;  %vm102_vm6 = vcmask 752640  }
  0x12   :  { %1827 = vrot.lane.b32.xlu1 %v1826_v2, %s2245_s26  ;;  %1822 = vrot.lane.b32.xlu0 %v1826_v2, %s2246_s27  ;;  %s2251_s9 = smov 92   ;;  %s2252_s10 = smov 90   ;;  %v2255_v45 = vmov 0.0   ;;  %vm120_vm7 = vcmask 736256   ;;  %vm2256_vm8 = vmmov 0   ;;  %v2257_v61 = vmov 0  }
  0x13   :  { %s2253_s11 = smov 111   ;;  %296 = vmatprep.mubr.f32.mxu0 %v2255_v45  ;;  %1628 = vmatprep.mubr.msk.f32.mxu1 %vm2256_vm8, %v2255_v45  ;;  %vm182_vm9 = vcmask 908288   ;;  %vm228_vm10 = vcmask 588800   ;;  %s1561_s15 = sld [smem:[#allocation3 + $0x1]]  ;;  %vm39_vm11 = vcmask 293888   ;;  %vm41_vm12 = vcmask 1048384  }
  0x14   :  { %1916 = vset.pattern.permute.xlu0 %v2257_v61  ;;  %s34_s16 = sld [smem:[#allocation3]]  ;;  %40 = vst.msk [vmem:[#allocation2] sm:$0xff] %vm39_vm11, %v2255_v45  ;;  %s2258_s19 = smov 36   ;;  %vm445_vm13 = vcmask 1047840   ;;  %vm448_vm14 = vcmask 850944   ;;  %vm1551_vm15 = vcmask 556032  }
  0x15   :  { %42 = vst.msk [vmem:[#allocation2 + $0x10] sm:$0xff] %vm41_vm12, %v2255_v45 }
  0x16   :  { %1832 = vrot.lane.b32.xlu1 %v1826_v2, %s2247_s30  ;;  %51 = vrot.lane.b32.xlu0 %v2309_v3, %s2246_s27 }
  0x1a   :  { %69 = vrot.lane.b32.xlu1 %v2309_v3, %s2247_s30  ;;  %60 = vrot.lane.b32.xlu0 %v2309_v3, %s2245_s26  ;;  %s2413_s17 = ssub.f32 %s1561_s15, %s34_s16 }
  0x1c   :  { %s376_s18 = smul.f32 0.5, %s2413_s17 }
  0x1e   :  { %1842 = vrot.lane.b32.xlu1 %v1826_v2, %s2248_s6  ;;  %1837 = vrot.lane.b32.xlu0 %v1826_v2, %s2249_s7 }
  0x22   :  { %87 = vrot.lane.b32.xlu1 %v2309_v3, %s2248_s6  ;;  %78 = vrot.lane.b32.xlu0 %v2309_v3, %s2249_s7 }
  0x26   :  { %1852 = vrot.lane.b32.xlu1 %v1826_v2, %s2250_s8  ;;  %1847 = vrot.lane.b32.xlu0 %v1826_v2, %s2251_s9 }
  0x2a   :  { %105 = vrot.lane.b32.xlu1 %v2309_v3, %s2250_s8  ;;  %96 = vrot.lane.b32.xlu0 %v2309_v3, %s2251_s9 }
  0x2e   :  { %118 = vrot.lane.b32.xlu1 %v2300_v1, %s2252_s10  ;;  %116 = vrot.lane.b32.xlu0 %v2295_v0, %s2252_s10 }
  0x32   :  { %114 = vrot.lane.b32.xlu0 %v2309_v3, %s2252_s10  ;;  %1857 = vrot.lane.b32.xlu1 %v1826_v2, %s2253_s11 }
  0x84   :  { %v1828_v5 = vpop.permute.xlu1 %1827  ;;  %v1823_v6 = vpop.permute.xlu0 %1822 }
  0x85   :  { %v1830_v7 = vunpack.i.h.bf16 %v1828_v5  ;;  %v1829_v8 = vunpack.i.l.bf16 %v1828_v5  ;;  %v1825_v9 = vunpack.i.h.bf16 %v1823_v6  ;;  %v1824_v10 = vunpack.i.l.bf16 %v1823_v6  ;;  %v37_v5 = vld [vmem:[%s2828_s3] sm:$0xff] }
  0x87   :  { %v59_v11 = vsel %vm57_vm0, %v1824_v10, %v1825_v9  ;;  %v68_v18 = vsel %vm66_vm1, %v1829_v8, %v1830_v7 }
  0x88   :  { %v1833_v12 = vpop.permute.xlu1 %1832  ;;  %v52_v13 = vpop.permute.xlu0 %51  ;;  %v1861_v14 = vpack.i.bf16 %v1825_v9, %v59_v11  ;;  %v1871_v23 = vpack.i.bf16 %v1830_v7, %v68_v18 }
  0x89   :  { %v1835_v15 = vunpack.i.h.bf16 %v1833_v12  ;;  %v1834_v16 = vunpack.i.l.bf16 %v1833_v12  ;;  %v58_v17 = vsel %vm57_vm0, %v52_v13, %v1824_v10 }
  0x8a   :  { %v1866_v19 = vpack.i.bf16 %v58_v17, %v2309_v3  ;;  %1862 = vrot.lane.b32.xlu0 %v1861_v14, %s2253_s11 }
  0x8b   :  { %v77_v20 = vsel %vm75_vm2, %v1834_v16, %v1835_v15 }
  0x8c   :  { %v70_v21 = vpop.permute.xlu1 %69  ;;  %1867 = vrot.lane.b32.xlu1 %v1866_v19, %s2253_s11  ;;  %v61_v22 = vpop.permute.xlu0 %60  ;;  %v1876_v24 = vpack.i.bf16 %v1835_v15, %v77_v20 }
  0x8d   :  { %v76_v25 = vsel %vm75_vm2, %v70_v21, %v1834_v16  ;;  %v67_v26 = vsel %vm66_vm1, %v61_v22, %v1829_v8 }
  0x8e   :  { %1872 = vrot.lane.b32.xlu0 %v1871_v23, %s2253_s11  ;;  %v1881_v27 = vpack.i.bf16 %v76_v25, %v67_v26 }
  0x90   :  { %v1843_v28 = vpop.permute.xlu1 %1842  ;;  %1877 = vrot.lane.b32.xlu1 %v1876_v24, %s2253_s11  ;;  %v1838_v29 = vpop.permute.xlu0 %1837 }
  0x91   :  { %v1845_v30 = vunpack.i.h.bf16 %v1843_v28  ;;  %v1844_v31 = vunpack.i.l.bf16 %v1843_v28  ;;  %v1840_v32 = vunpack.i.h.bf16 %v1838_v29  ;;  %v1839_v33 = vunpack.i.l.bf16 %v1838_v29 }
  0x92   :  { %1882 = vrot.lane.b32.xlu0 %v1881_v27, %s2253_s11 }
  0x93   :  { %v95_v34 = vsel %vm93_vm3, %v1844_v31, %v1845_v30  ;;  %v86_v35 = vsel %vm84_vm4, %v1839_v33, %v1840_v32 }
  0x94   :  { %v88_v36 = vpop.permute.xlu1 %87  ;;  %v79_v37 = vpop.permute.xlu0 %78  ;;  %v1891_v38 = vpack.i.bf16 %v1845_v30, %v95_v34  ;;  %v1886_v39 = vpack.i.bf16 %v1840_v32, %v86_v35 }
  0x95   :  { %v94_v40 = vsel %vm93_vm3, %v88_v36, %v1844_v31  ;;  %v85_v41 = vsel %vm84_vm4, %v79_v37, %v1839_v33 }
  0x96   :  { %1892 = vrot.lane.b32.xlu0 %v1891_v38, %s2253_s11  ;;  %1887 = vrot.lane.b32.xlu1 %v1886_v39, %s2253_s11  ;;  %v1896_v42 = vpack.i.bf16 %v94_v40, %v85_v41 }
  0x98   :  { %v1853_v43 = vpop.permute.xlu1 %1852  ;;  %v1848_v44 = vpop.permute.xlu0 %1847 }
  0x99   :  { %v1855_v46 = vunpack.i.h.bf16 %v1853_v43  ;;  %v1854_v47 = vunpack.i.l.bf16 %v1853_v43  ;;  %v1850_v48 = vunpack.i.h.bf16 %v1848_v44  ;;  %v1849_v49 = vunpack.i.l.bf16 %v1848_v44 }
  0x9a   :  { %1897 = vrot.lane.b32.xlu1 %v1896_v42, %s2253_s11 }
  0x9b   :  { %v104_v50 = vsel %vm102_vm6, %v1849_v49, %v1850_v48  ;;  %v113_v51 = vsel %vm111_vm5, %v1854_v47, %v1855_v46 }
  0x9c   :  { %v106_v52 = vpop.permute.xlu1 %105  ;;  %v97_v53 = vpop.permute.xlu0 %96  ;;  %v1901_v54 = vpack.i.bf16 %v1850_v48, %v104_v50  ;;  %v1906_v55 = vpack.i.bf16 %v1855_v46, %v113_v51 }
  0x9d   :  { %v112_v56 = vsel %vm111_vm5, %v106_v52, %v1854_v47  ;;  %v103_v57 = vsel %vm102_vm6, %v97_v53, %v1849_v49 }
  0x9e   :  { %1902 = vrot.lane.b32.xlu0 %v1901_v54, %s2253_s11  ;;  %1907 = vrot.lane.b32.xlu1 %v1906_v55, %s2253_s11  ;;  %v1911_v58 = vpack.i.bf16 %v112_v56, %v103_v57 }
  0xa0   :  { %v119_v59 = vpop.permute.xlu1 %118  ;;  %v117_v60 = vpop.permute.xlu0 %116 }
  0xa1   :  { %v122_v62 = vsel %vm120_vm7, %v117_v60, %v119_v59 }
  0xa2   :  { %1912 = vrot.lane.b32.xlu0 %v1911_v58, %s2253_s11  ;;  %178 = vrot.lane.b32.xlu1 %v122_v62, %s2253_s11 }
  0xa4   :  { %v115_v63 = vpop.permute.xlu0 %114  ;;  %v1858_v6 = vpop.permute.xlu1 %1857 }
  0xa5   :  { %v121_v2 = vsel %vm120_vm7, %v115_v63, %v117_v60  ;;  %v1859_v7 = vunpack.i.l.bf16 %v1858_v6  ;;  %v1860_v8 = vunpack.i.h.bf16 %v1858_v6 }
  0xa6   :  { %180 = vrot.lane.b32.xlu0 %v119_v59, %s2253_s11  ;;  %176 = vrot.lane.b32.xlu1 %v121_v2, %s2253_s11 }
  0xa7   :  { %v184_v12 = vsel %vm182_vm9, %v1859_v7, %v1860_v8 }
  0xaa   :  { %125 = vperm.xlu0 %1916, %v37_v5  }
  0xfc   :  { %v1863_v9 = vpop.permute.xlu0 %1862 }
  0xfd   :  { %v1864_v10 = vunpack.i.l.bf16 %v1863_v9  ;;  %v1865_v11 = vunpack.i.h.bf16 %v1863_v9 }
  0xfe   :  { %v1868_v13 = vpop.permute.xlu1 %1867 }
  0xff   :  { %v1870_v14 = vunpack.i.h.bf16 %v1868_v13  ;;  %v1869_v15 = vunpack.i.l.bf16 %v1868_v13  ;;  %v1711_v16 = vpack.c.bf16 %v1865_v11, %v1860_v8  ;;  %v186_v17 = vsel %vm182_vm9, %v1864_v10, %v1865_v11  ;;  %v2398_v11 = vld [vmem:[%s2827_s2] sm:$0xff] }
 0x100   :  { %v1873_v18 = vpop.permute.xlu0 %1872  ;;  %v1694_v19 = vpack.c.bf16 %v186_v17, %v184_v12 }
 0x101   :  { %v1875_v20 = vunpack.i.h.bf16 %v1873_v18  ;;  %v1874_v21 = vunpack.i.l.bf16 %v1873_v18  ;;  %1712 = vmatpush3.bf16.msra.mxu1 %v1711_v16  ;;  %v183_v22 = vsel %vm182_vm9, %v1869_v15, %v1859_v7  ;;  %v185_v23 = vsel %vm182_vm9, %v1870_v14, %v1864_v10 }
 0x102   :  { %v1878_v24 = vpop.permute.xlu1 %1877  ;;  %1695 = vmatprep.subr.bf16.mxu0 %v1694_v19  ;;  %v1696_v25 = vpack.c.bf16 %v185_v23, %v183_v22  ;;  %1713 = vmatprep.subr.bf16.mxu1 %v2254_v4 }
 0x103   :  { %v1880_v26 = vunpack.i.h.bf16 %v1878_v24  ;;  %v1879_v27 = vunpack.i.l.bf16 %v1878_v24  ;;  %v188_v29 = vsel %vm182_vm9, %v1874_v21, %v1875_v20 }
 0x104   :  { %v1883_v28 = vpop.permute.xlu0 %1882  ;;  %1697 = vmatpush1.bf16.msra.mxu0 %v1696_v25  ;;  %v2418_v25 = vstv %s376_s18 }
 0x105   :  { %v1885_v30 = vunpack.i.h.bf16 %v1883_v28  ;;  %v1884_v31 = vunpack.i.l.bf16 %v1883_v28  ;;  %v1714_v32 = vpack.c.bf16 %v1880_v26, %v1875_v20  ;;  %v190_v33 = vsel %vm182_vm9, %v1879_v27, %v1880_v26 }
 0x106   :  { %v1698_v34 = vpack.c.bf16 %v190_v33, %v188_v29 }
 0x107   :  { %1715 = vmatpush3.bf16.msra.mxu1 %v1714_v32  ;;  %v187_v35 = vsel %vm182_vm9, %v1884_v31, %v1874_v21  ;;  %v189_v36 = vsel %vm182_vm9, %v1885_v30, %v1879_v27 }
 0x108   :  { %v1893_v37 = vpop.permute.xlu0 %1892  ;;  %1699 = vmatprep.subr.bf16.mxu0 %v1698_v34  ;;  %v1888_v38 = vpop.permute.xlu1 %1887  ;;  %v1700_v39 = vpack.c.bf16 %v189_v36, %v187_v35  ;;  %1716 = vmatprep.subr.bf16.mxu1 %v2254_v4 }
 0x109   :  { %v1895_v40 = vunpack.i.h.bf16 %v1893_v37  ;;  %v1894_v41 = vunpack.i.l.bf16 %v1893_v37  ;;  %v1890_v42 = vunpack.i.h.bf16 %v1888_v38  ;;  %v1889_v43 = vunpack.i.l.bf16 %v1888_v38 }
 0x10a   :  { %1701 = vmatpush1.bf16.msra.mxu0 %v1700_v39 }
 0x10b   :  { %v1717_v44 = vpack.c.bf16 %v1895_v40, %v1890_v42  ;;  %v192_v46 = vsel %vm182_vm9, %v1889_v43, %v1890_v42  ;;  %v194_v47 = vsel %vm182_vm9, %v1894_v41, %v1895_v40  ;;  %v399_v40 = vlaneseq }
 0x10c   :  { %v1898_v48 = vpop.permute.xlu1 %1897  ;;  %v1702_v49 = vpack.c.bf16 %v194_v47, %v192_v46  ;;  %v38_v46 = vld [vmem:[%s2829_s4] sm:$0x7] }
 0x10d   :  { %v1900_v50 = vunpack.i.h.bf16 %v1898_v48  ;;  %v1899_v51 = vunpack.i.l.bf16 %v1898_v48  ;;  %1718 = vmatpush3.bf16.msra.mxu1 %v1717_v44 }
 0x10e   :  { %1703 = vmatprep.subr.bf16.mxu0 %v1702_v49  ;;  %1719 = vmatprep.subr.bf16.mxu1 %v2254_v4 }
 0x10f   :  { %v191_v52 = vsel %vm182_vm9, %v1899_v51, %v1889_v43  ;;  %v193_v53 = vsel %vm182_vm9, %v1900_v50, %v1894_v41  ;;  %v400_v41 = vshrl.u32 %v399_v40, 7 }
 0x110   :  { %v1903_v54 = vpop.permute.xlu0 %1902  ;;  %v1908_v55 = vpop.permute.xlu1 %1907  ;;  %v1704_v56 = vpack.c.bf16 %v193_v53, %v191_v52 }
 0x111   :  { %v1905_v57 = vunpack.i.h.bf16 %v1903_v54  ;;  %v1904_v58 = vunpack.i.l.bf16 %v1903_v54  ;;  %v1910_v59 = vunpack.i.h.bf16 %v1908_v55  ;;  %v1909_v60 = vunpack.i.l.bf16 %v1908_v55 }
 0x112   :  { %1705 = vmatpush1.bf16.msra.mxu0 %v1704_v56  ;;  %v401_v42 = vsub.s32 0, %v400_v41  ;;  %v405_v43 = vsub.s32 1, %v400_v41  ;;  %v409_v47 = vsub.s32 2, %v400_v41 }
 0x113   :  { %v1720_v61 = vpack.c.bf16 %v1910_v59, %v1905_v57  ;;  %v196_v62 = vsel %vm182_vm9, %v1904_v58, %v1905_v57  ;;  %v198_v63 = vsel %vm182_vm9, %v1909_v60, %v1910_v59 }
 0x114   :  { %v1913_v2 = vpop.permute.xlu0 %1912  ;;  %v179_v5 = vpop.permute.xlu1 %178  ;;  %v1706_v6 = vpack.c.bf16 %v198_v63, %v196_v62  ;;  %v2449_v48 = vrot.slane %v38_v46, %v401_v42  ;;  %v2451_v49 = vrot.slane %v38_v46, %v405_v43  ;;  %v2455_v54 = vrot.slane %v38_v46, %v409_v47 }
 0x115   :  { %v1915_v7 = vunpack.i.h.bf16 %v1913_v2  ;;  %v1914_v8 = vunpack.i.l.bf16 %v1913_v2  ;;  %1721 = vmatpush3.bf16.msra.mxu1 %v1720_v61 }
 0x116   :  { %1707 = vmatprep.subr.bf16.mxu0 %v1706_v6  ;;  %1626 = vmatprep.subr.mxu1 %v2255_v45 }
 0x117   :  { %v195_v9 = vsel %vm182_vm9, %v1914_v8, %v1904_v58  ;;  %v197_v10 = vsel %vm182_vm9, %v1915_v7, %v1909_v60 }
 0x118   :  { %v181_v12 = vpop.permute.xlu0 %180  ;;  %v1708_v13 = vpack.c.bf16 %v197_v10, %v195_v9  ;;  %v177_v15 = vpop.permute.xlu1 %176 }
 0x119   :  { %1627 = vmatpush3.msra.mxu1 %v181_v12  ;;  %v200_v14 = vsel %vm182_vm9, %v179_v5, %v181_v12  ;;  %v199_v16 = vsel %vm182_vm9, %v177_v15, %v179_v5 }
 0x11a   :  { %1709 = vmatpush1.bf16.msra.mxu0 %v1708_v13  ;;  %1629 = vmatmul.mubr.msk.f32.vlgmr.msra.gmra.mrb[0].mxu1 %vm228_vm10, %v2398_v11 }
 0x11b   :  { %248 = vmatprep.subr.mxu0 %v200_v14  ;;  %1738 = vmatprep.subr.bf16.mxu1 %v2254_v4 }
 0x11c   :  { %1649 = vmatprep.mubr.msk.f32.mxu1 %vm2256_vm8, %v2255_v45 }
 0x11e   :  { %249 = vmatpush1.msra.mxu0 %v199_v16 }
 0x11f   :  { %1562 = vmatmul.mubr.msk.f32.vlgmr.msra.gmra.mrb[0].mxu0 %vm228_vm10, %v2398_v11 }
 0x120   :  { %683 = vmatprep.mubr.f32.mxu0 %v2255_v45 }
 0x129   :  { %v2410_v17 = vpop.permute.xlu0 %125 }
 0x1ed   :  { %v369_v18 = vpop.f32.mrb[0].mxu1 }
 0x1ee   :  { %v370_v19 = vadd.f32 %v369_v18, %v2410_v17  ;;  %v1630_v20 = vpop.f32.mrb[1].mxu1 }
 0x1f0   :  { %2202 = vtanh.f32 %v370_v19 }
 0x1f2   :  { %v298_v21 = vpop.f32.mrb[0].mxu0 }
 0x1f3   :  { %v299_v22 = vadd.f32 %v298_v21, %v2410_v17  ;;  %v300_v23 = vpop.f32.mrb[1].mxu0 }
 0x1f4   :  { %v301_v24 = vadd.f32 %v300_v23, %v2410_v17 }
 0x1f5   :  { %2204 = vtanh.f32 %v299_v22 }
 0x1f6   :  { %2206 = vtanh.f32 %v301_v24 }
 0x1fa   :  { %v2422_v26 = vpop.eup %2202 }
 0x1fb   :  { %v380_v27 = vmul.f32 %v2422_v26, %v2418_v25 }
 0x1fd   :  { %388 = vrot.lane.b32.xlu0 %v380_v27, %s2258_s19 }
 0x1ff   :  { %v2427_v28 = vpop.eup %2204 }
 0x200   :  { %v378_v29 = vmul.f32 %v2427_v28, %v2418_v25  ;;  %v2431_v30 = vpop.eup %2206 }
 0x201   :  { %v379_v31 = vmul.f32 %v2431_v30, %v2418_v25 }
 0x202   :  { %384 = vrot.lane.b32.xlu1 %v378_v29, %s2258_s19 }
 0x206   :  { %386 = vrot.lane.b32.xlu1 %v379_v31, %s2258_s19 }
 0x26f   :  { %v389_v34 = vpop.permute.xlu0 %388 }
 0x274   :  { %v385_v32 = vpop.permute.xlu1 %384 }
 0x275   :  { %v395_v33 = vadd.f32 %v385_v32, %v2309_v3 }
 0x277   :  { %417 = vrot.lane.b32.xlu1 %v395_v33, %s2251_s9 }
 0x278   :  { %v387_v35 = vpop.permute.xlu1 %386 }
 0x279   :  { %v390_v36 = vsel %vm39_vm11, %v385_v32, %v387_v35  ;;  %v391_v37 = vsel %vm39_vm11, %v387_v35, %v389_v34 }
 0x27a   :  { %v397_v38 = vadd.f32 %v391_v37, %v2300_v1  ;;  %v396_v39 = vadd.f32 %v390_v36, %v2295_v0 }
 0x27c   :  { %421 = vrot.lane.b32.xlu1 %v397_v38, %s2251_s9  ;;  %419 = vrot.lane.b32.xlu0 %v396_v39, %s2251_s9 }
 0x2e9   :  { %v418_v44 = vpop.permute.xlu1 %417 }
 0x2ee   :  { %v420_v50 = vpop.permute.xlu0 %419  ;;  %v422_v51 = vpop.permute.xlu1 %421 }
 0x2ef   :  { %v423_v52 = vsel %vm102_vm6, %v418_v44, %v420_v50  ;;  %v424_v53 = vsel %vm102_vm6, %v420_v50, %v422_v51  ;;  %v430_v57 = vmul.f32 %v422_v51, %v2455_v54 }
 0x2f0   :  { %v428_v55 = vmul.f32 %v423_v52, %v2449_v48  ;;  %v429_v56 = vmul.f32 %v424_v53, %v2451_v49 }
 0x2f2   :  { %434 = vrot.lane.b32.xlu0 %v428_v55, %s2258_s19  ;;  %436 = vrot.lane.b32.xlu1 %v429_v56, %s2258_s19 }
 0x2f6   :  { %438 = vrot.lane.b32.xlu0 %v430_v57, %s2258_s19 }
 0x364   :  { %v435_v58 = vpop.permute.xlu0 %434  ;;  %v437_v59 = vpop.permute.xlu1 %436 }
 0x365   :  { %446 = vst.msk [vmem:[#allocation2] sm:$0xff] %vm445_vm13, %v435_v58  ;;  %v440_v2 = vsel %vm39_vm11, %v435_v58, %v437_v59 }
 0x368   :  { %v439_v60 = vpop.permute.xlu0 %438 }
 0x369   :  { %v441_v61 = vsel %vm39_vm11, %v437_v59, %v439_v60 }
 0x36a   :  { %449 = vst.msk [vmem:[#allocation2 + $0x10] sm:$0xff] %vm448_vm14, %v441_v61 }
 0x36c   :  { %v450_v62 = vld [vmem:[#allocation2] sm:$0xff] }
 0x36d   :  { %456 = vrot.lane.b32.xlu0 %v450_v62, %s2246_s27  ;;  %464 = vrot.lane.b32.xlu1 %v450_v62, %s2245_s26 }
 0x371   :  { %472 = vrot.lane.b32.xlu0 %v450_v62, %s2247_s30  ;;  %480 = vrot.lane.b32.xlu1 %v450_v62, %s2249_s7  ;;  %v452_v63 = vld [vmem:[#allocation2 + $0x10] sm:$0xff] }
 0x372   :  { %v1927_v5 = vpack.i.bf16 %v452_v63, %v440_v2 }
 0x375   :  { %488 = vrot.lane.b32.xlu0 %v450_v62, %s2248_s6  ;;  %496 = vrot.lane.b32.xlu1 %v450_v62, %s2251_s9 }
 0x379   :  { %1928 = vrot.lane.b32.xlu0 %v1927_v5, %s2247_s30  ;;  %1918 = vrot.lane.b32.xlu1 %v1927_v5, %s2246_s27 }
 0x37d   :  { %1938 = vrot.lane.b32.xlu0 %v1927_v5, %s2248_s6  ;;  %1923 = vrot.lane.b32.xlu1 %v1927_v5, %s2245_s26 }
 0x381   :  { %1948 = vrot.lane.b32.xlu0 %v1927_v5, %s2250_s8  ;;  %1933 = vrot.lane.b32.xlu1 %v1927_v5, %s2249_s7 }
 0x385   :  { %504 = vrot.lane.b32.xlu0 %v450_v62, %s2250_s8  ;;  %1943 = vrot.lane.b32.xlu1 %v1927_v5, %s2251_s9 }
 0x389   :  { %516 = vrot.lane.b32.xlu0 %v452_v63, %s2252_s10  ;;  %514 = vrot.lane.b32.xlu1 %v440_v2, %s2252_s10 }
 0x38d   :  { %1953 = vrot.lane.b32.xlu0 %v1927_v5, %s2253_s11  ;;  %512 = vrot.lane.b32.xlu1 %v450_v62, %s2252_s10 }
 0x3df   :  { %v457_v6 = vpop.permute.xlu0 %456  ;;  %v465_v7 = vpop.permute.xlu1 %464 }
 0x3e3   :  { %v473_v8 = vpop.permute.xlu0 %472  ;;  %v481_v9 = vpop.permute.xlu1 %480 }
 0x3e7   :  { %v489_v10 = vpop.permute.xlu0 %488  ;;  %v497_v12 = vpop.permute.xlu1 %496 }
 0x3eb   :  { %v1929_v13 = vpop.permute.xlu0 %1928  ;;  %v1919_v14 = vpop.permute.xlu1 %1918 }
 0x3ec   :  { %v1931_v15 = vunpack.i.h.bf16 %v1929_v13  ;;  %v1930_v16 = vunpack.i.l.bf16 %v1929_v13  ;;  %v1921_v18 = vunpack.i.h.bf16 %v1919_v14  ;;  %v1920_v19 = vunpack.i.l.bf16 %v1919_v14 }
 0x3ee   :  { %v463_v20 = vsel %vm57_vm0, %v1920_v19, %v1921_v18  ;;  %v462_v21 = vsel %vm57_vm0, %v457_v6, %v1920_v19  ;;  %v479_v32 = vsel %vm75_vm2, %v1930_v16, %v1931_v15  ;;  %v478_v43 = vsel %vm75_vm2, %v473_v8, %v1930_v16 }
 0x3ef   :  { %v1939_v22 = vpop.permute.xlu0 %1938  ;;  %v1924_v23 = vpop.permute.xlu1 %1923  ;;  %v1957_v24 = vpack.i.bf16 %v1921_v18, %v463_v20  ;;  %v1962_v27 = vpack.i.bf16 %v462_v21, %v450_v62  ;;  %v1972_v38 = vpack.i.bf16 %v1931_v15, %v479_v32 }
 0x3f0   :  { %v1926_v29 = vunpack.i.h.bf16 %v1924_v23  ;;  %v1925_v31 = vunpack.i.l.bf16 %v1924_v23  ;;  %v1941_v34 = vunpack.i.h.bf16 %v1939_v22  ;;  %v1940_v35 = vunpack.i.l.bf16 %v1939_v22 }
 0x3f1   :  { %1958 = vrot.lane.b32.xlu1 %v1957_v24, %s2253_s11  ;;  %1963 = vrot.lane.b32.xlu0 %v1962_v27, %s2253_s11 }
 0x3f2   :  { %v471_v33 = vsel %vm66_vm1, %v1925_v31, %v1926_v29  ;;  %v470_v42 = vsel %vm66_vm1, %v465_v7, %v1925_v31  ;;  %v495_v52 = vsel %vm93_vm3, %v1940_v35, %v1941_v34  ;;  %v494_v58 = vsel %vm93_vm3, %v489_v10, %v1940_v35 }
 0x3f3   :  { %v1934_v36 = vpop.permute.xlu1 %1933  ;;  %v1967_v37 = vpack.i.bf16 %v1926_v29, %v471_v33  ;;  %v1949_v39 = vpop.permute.xlu0 %1948  ;;  %v1977_v50 = vpack.i.bf16 %v478_v43, %v470_v42  ;;  %v1987_v60 = vpack.i.bf16 %v1941_v34, %v495_v52 }
 0x3f4   :  { %v1936_v40 = vunpack.i.h.bf16 %v1934_v36  ;;  %v1935_v41 = vunpack.i.l.bf16 %v1934_v36  ;;  %v1951_v46 = vunpack.i.h.bf16 %v1949_v39  ;;  %v1950_v53 = vunpack.i.l.bf16 %v1949_v39 }
 0x3f5   :  { %1968 = vrot.lane.b32.xlu1 %v1967_v37, %s2253_s11  ;;  %1973 = vrot.lane.b32.xlu0 %v1972_v38, %s2253_s11 }
 0x3f6   :  { %v487_v44 = vsel %vm84_vm4, %v1935_v41, %v1936_v40  ;;  %v486_v57 = vsel %vm84_vm4, %v481_v9, %v1935_v41  ;;  %v511_v63 = vsel %vm111_vm5, %v1950_v53, %v1951_v46 }
 0x3f7   :  { %v1944_v47 = vpop.permute.xlu1 %1943  ;;  %v1982_v51 = vpack.i.bf16 %v1936_v40, %v487_v44  ;;  %v505_v59 = vpop.permute.xlu0 %504  ;;  %v1992_v61 = vpack.i.bf16 %v494_v58, %v486_v57  ;;  %v2002_v6 = vpack.i.bf16 %v1951_v46, %v511_v63 }
 0x3f8   :  { %v1946_v55 = vunpack.i.h.bf16 %v1944_v47  ;;  %v1945_v56 = vunpack.i.l.bf16 %v1944_v47  ;;  %v510_v9 = vsel %vm111_vm5, %v505_v59, %v1950_v53 }
 0x3f9   :  { %1978 = vrot.lane.b32.xlu1 %v1977_v50, %s2253_s11  ;;  %1983 = vrot.lane.b32.xlu0 %v1982_v51, %s2253_s11 }
 0x3fa   :  { %v503_v62 = vsel %vm102_vm6, %v1945_v56, %v1946_v55  ;;  %v502_v7 = vsel %vm102_vm6, %v497_v12, %v1945_v56 }
 0x3fb   :  { %v515_v2 = vpop.permute.xlu1 %514  ;;  %v1997_v5 = vpack.i.bf16 %v1946_v55, %v503_v62  ;;  %v517_v8 = vpop.permute.xlu0 %516  ;;  %v2007_v10 = vpack.i.bf16 %v510_v9, %v502_v7 }
 0x3fc   :  { %v519_v13 = vsel %vm120_vm7, %v515_v2, %v517_v8 }
 0x3fd   :  { %1988 = vrot.lane.b32.xlu1 %v1987_v60, %s2253_s11  ;;  %1993 = vrot.lane.b32.xlu0 %v1992_v61, %s2253_s11 }
 0x3ff   :  { %v513_v14 = vpop.permute.xlu1 %512  ;;  %v1954_v12 = vpop.permute.xlu0 %1953 }
 0x400   :  { %v518_v15 = vsel %vm120_vm7, %v513_v14, %v515_v2  ;;  %v1956_v16 = vunpack.i.h.bf16 %v1954_v12  ;;  %v1955_v18 = vunpack.i.l.bf16 %v1954_v12 }
 0x401   :  { %1998 = vrot.lane.b32.xlu1 %v1997_v5, %s2253_s11  ;;  %2003 = vrot.lane.b32.xlu0 %v2002_v6, %s2253_s11 }
 0x402   :  { %v575_v27 = vsel %vm182_vm9, %v1955_v18, %v1956_v16 }
 0x405   :  { %2008 = vrot.lane.b32.xlu1 %v2007_v10, %s2253_s11  ;;  %570 = vrot.lane.b32.xlu0 %v519_v13, %s2253_s11 }
 0x409   :  { %572 = vrot.lane.b32.xlu1 %v517_v8, %s2253_s11  ;;  %568 = vrot.lane.b32.xlu0 %v518_v15, %s2253_s11 }
 0x463   :  { %v1959_v19 = vpop.permute.xlu1 %1958  ;;  %v1964_v20 = vpop.permute.xlu0 %1963 }
 0x464   :  { %v1961_v21 = vunpack.i.h.bf16 %v1959_v19  ;;  %v1960_v22 = vunpack.i.l.bf16 %v1959_v19  ;;  %v1966_v23 = vunpack.i.h.bf16 %v1964_v20  ;;  %v1965_v24 = vunpack.i.l.bf16 %v1964_v20 }
 0x466   :  { %v1739_v29 = vpack.c.bf16 %v1961_v21, %v1956_v16  ;;  %v576_v31 = vsel %vm182_vm9, %v1966_v23, %v1960_v22  ;;  %v574_v32 = vsel %vm182_vm9, %v1965_v24, %v1955_v18  ;;  %v577_v33 = vsel %vm182_vm9, %v1960_v22, %v1961_v21 }
 0x467   :  { %v1969_v34 = vpop.permute.xlu1 %1968  ;;  %v1974_v35 = vpop.permute.xlu0 %1973  ;;  %v1722_v36 = vpack.c.bf16 %v577_v33, %v575_v27  ;;  %v1724_v37 = vpack.c.bf16 %v576_v31, %v574_v32 }
 0x468   :  { %v1971_v38 = vunpack.i.h.bf16 %v1969_v34  ;;  %v1970_v39 = vunpack.i.l.bf16 %v1969_v34  ;;  %v1976_v40 = vunpack.i.h.bf16 %v1974_v35  ;;  %v1975_v41 = vunpack.i.l.bf16 %v1974_v35  ;;  %1740 = vmatpush3.bf16.msra.mxu1 %v1739_v29 }
 0x469   :  { %1723 = vmatprep.subr.bf16.mxu0 %v1722_v36  ;;  %1741 = vmatprep.subr.bf16.mxu1 %v2254_v4 }
 0x46a   :  { %v1742_v42 = vpack.c.bf16 %v1976_v40, %v1971_v38  ;;  %1725 = vmatpush1.bf16.msra.mxu0 %v1724_v37  ;;  %v579_v43 = vsel %vm182_vm9, %v1970_v39, %v1971_v38  ;;  %v581_v44 = vsel %vm182_vm9, %v1975_v41, %v1976_v40 }
 0x46b   :  { %v1979_v46 = vpop.permute.xlu1 %1978  ;;  %v1984_v47 = vpop.permute.xlu0 %1983  ;;  %v1726_v50 = vpack.c.bf16 %v581_v44, %v579_v43 }
 0x46c   :  { %v1981_v51 = vunpack.i.h.bf16 %v1979_v46  ;;  %v1980_v52 = vunpack.i.l.bf16 %v1979_v46  ;;  %1743 = vmatpush3.bf16.msra.mxu1 %v1742_v42  ;;  %v1986_v53 = vunpack.i.h.bf16 %v1984_v47  ;;  %v1985_v55 = vunpack.i.l.bf16 %v1984_v47 }
 0x46d   :  { %1727 = vmatprep.subr.bf16.mxu0 %v1726_v50  ;;  %1744 = vmatprep.subr.bf16.mxu1 %v2254_v4 }
 0x46e   :  { %v578_v56 = vsel %vm182_vm9, %v1980_v52, %v1970_v39  ;;  %v580_v57 = vsel %vm182_vm9, %v1981_v51, %v1975_v41  ;;  %v583_v5 = vsel %vm182_vm9, %v1985_v55, %v1986_v53 }
 0x46f   :  { %v1728_v58 = vpack.c.bf16 %v580_v57, %v578_v56  ;;  %v1989_v59 = vpop.permute.xlu1 %1988  ;;  %v1994_v60 = vpop.permute.xlu0 %1993 }
 0x470   :  { %v1991_v61 = vunpack.i.h.bf16 %v1989_v59  ;;  %v1990_v62 = vunpack.i.l.bf16 %v1989_v59  ;;  %v1996_v63 = vunpack.i.h.bf16 %v1994_v60  ;;  %v1995_v2 = vunpack.i.l.bf16 %v1994_v60 }
 0x471   :  { %1729 = vmatpush1.bf16.msra.mxu0 %v1728_v58 }
 0x472   :  { %v1745_v6 = vpack.c.bf16 %v1991_v61, %v1986_v53  ;;  %v584_v7 = vsel %vm182_vm9, %v1996_v63, %v1990_v62  ;;  %v582_v8 = vsel %vm182_vm9, %v1995_v2, %v1985_v55  ;;  %v585_v9 = vsel %vm182_vm9, %v1990_v62, %v1991_v61 }
 0x473   :  { %v1732_v10 = vpack.c.bf16 %v584_v7, %v582_v8  ;;  %v1999_v13 = vpop.permute.xlu1 %1998  ;;  %v2004_v14 = vpop.permute.xlu0 %2003  ;;  %v1730_v15 = vpack.c.bf16 %v585_v9, %v583_v5 }
 0x474   :  { %v2001_v12 = vunpack.i.h.bf16 %v1999_v13  ;;  %v2000_v16 = vunpack.i.l.bf16 %v1999_v13  ;;  %v2006_v18 = vunpack.i.h.bf16 %v2004_v14  ;;  %v2005_v19 = vunpack.i.l.bf16 %v2004_v14  ;;  %1746 = vmatpush3.bf16.msra.mxu1 %v1745_v6 }
 0x475   :  { %1731 = vmatprep.subr.bf16.mxu0 %v1730_v15  ;;  %1747 = vmatprep.subr.bf16.mxu1 %v2254_v4 }
 0x476   :  { %v1748_v20 = vpack.c.bf16 %v2006_v18, %v2001_v12  ;;  %1733 = vmatpush1.bf16.msra.mxu0 %v1732_v10  ;;  %v587_v21 = vsel %vm182_vm9, %v2000_v16, %v2001_v12  ;;  %v589_v22 = vsel %vm182_vm9, %v2005_v19, %v2006_v18 }
 0x477   :  { %v2009_v23 = vpop.permute.xlu1 %2008  ;;  %v571_v24 = vpop.permute.xlu0 %570  ;;  %v1734_v27 = vpack.c.bf16 %v589_v22, %v587_v21 }
 0x478   :  { %v2011_v29 = vunpack.i.h.bf16 %v2009_v23  ;;  %v2010_v31 = vunpack.i.l.bf16 %v2009_v23  ;;  %1749 = vmatpush3.bf16.msra.mxu1 %v1748_v20 }
 0x479   :  { %1735 = vmatprep.subr.bf16.mxu0 %v1734_v27  ;;  %1647 = vmatprep.subr.mxu1 %v2255_v45 }
 0x47a   :  { %v586_v32 = vsel %vm182_vm9, %v2010_v31, %v2000_v16  ;;  %v588_v33 = vsel %vm182_vm9, %v2011_v29, %v2005_v19 }
 0x47b   :  { %v1736_v34 = vpack.c.bf16 %v588_v33, %v586_v32  ;;  %v573_v35 = vpop.permute.xlu1 %572  ;;  %v569_v37 = vpop.permute.xlu0 %568 }
 0x47c   :  { %1648 = vmatpush3.msra.mxu1 %v573_v35  ;;  %v591_v36 = vsel %vm182_vm9, %v571_v24, %v573_v35  ;;  %v590_v38 = vsel %vm182_vm9, %v569_v37, %v571_v24 }
 0x47d   :  { %1737 = vmatpush1.bf16.msra.mxu0 %v1736_v34  ;;  %1650 = vmatmul.mubr.msk.f32.vlgmr.msra.gmra.mrb[2].mxu1 %vm228_vm10, %v2398_v11 }
 0x47e   :  { %635 = vmatprep.subr.mxu0 %v591_v36  ;;  %1766 = vmatprep.subr.bf16.mxu1 %v2254_v4 }
 0x47f   :  { %1670 = vmatprep.mubr.msk.f32.mxu1 %vm2256_vm8, %v2255_v45 }
 0x481   :  { %636 = vmatpush1.msra.mxu0 %v590_v38 }
 0x482   :  { %1564 = vmatmul.mubr.msk.f32.vlgmr.msra.gmra.mrb[2].mxu0 %vm228_vm10, %v2398_v11 }
 0x483   :  { %1050 = vmatprep.mubr.f32.mxu0 %v2255_v45 }
 0x550   :  { %v756_v39 = vpop.f32.mrb[2].mxu1 }
 0x551   :  { %v1651_v40 = vpop.f32.mrb[3].mxu1  ;;  %v757_v42 = vadd.f32 %v756_v39, %v2410_v17 }
 0x555   :  { %v685_v41 = vpop.f32.mrb[2].mxu0 }
 0x556   :  { %v686_v43 = vadd.f32 %v685_v41, %v2410_v17  ;;  %v687_v44 = vpop.f32.mrb[3].mxu0 }
 0x557   :  { %v688_v46 = vadd.f32 %v687_v44, %v2410_v17 }
 0x558   :  { %2208 = vtanh.f32 %v686_v43 }
 0x559   :  { %2210 = vtanh.f32 %v688_v46 }
 0x55a   :  { %2212 = vtanh.f32 %v757_v42 }
 0x562   :  { %v2548_v47 = vpop.eup %2208 }
 0x563   :  { %v2550_v50 = vpop.eup %2210  ;;  %v763_v51 = vmul.f32 %v2548_v47, %v2418_v25 }
 0x564   :  { %v2554_v52 = vpop.eup %2212  ;;  %v764_v53 = vmul.f32 %v2550_v50, %v2418_v25 }
 0x565   :  { %769 = vrot.lane.b32.xlu1 %v763_v51, %s2258_s19  ;;  %v765_v55 = vmul.f32 %v2554_v52, %v2418_v25 }
 0x566   :  { %771 = vrot.lane.b32.xlu0 %v764_v53, %s2258_s19 }
 0x569   :  { %773 = vrot.lane.b32.xlu1 %v765_v55, %s2258_s19 }
 0x5d7   :  { %v770_v56 = vpop.permute.xlu1 %769 }
 0x5d8   :  { %v780_v57 = vadd.f32 %v770_v56, %v2309_v3  ;;  %v772_v58 = vpop.permute.xlu0 %771 }
 0x5d9   :  { %v775_v59 = vsel %vm39_vm11, %v770_v56, %v772_v58 }
 0x5da   :  { %v781_v60 = vadd.f32 %v775_v59, %v2295_v0  ;;  %786 = vrot.lane.b32.xlu0 %v780_v57, %s2251_s9 }
 0x5db   :  { %v774_v61 = vpop.permute.xlu1 %773 }
 0x5dc   :  { %v776_v62 = vsel %vm39_vm11, %v772_v58, %v774_v61  ;;  %788 = vrot.lane.b32.xlu1 %v781_v60, %s2251_s9 }
 0x5dd   :  { %v782_v63 = vadd.f32 %v776_v62, %v2300_v1 }
 0x5df   :  { %790 = vrot.lane.b32.xlu0 %v782_v63, %s2251_s9 }
 0x64c   :  { %v787_v25 = vpop.permute.xlu0 %786 }
 0x64e   :  { %v789_v2 = vpop.permute.xlu1 %788 }
 0x64f   :  { %v792_v3 = vsel %vm102_vm6, %v787_v25, %v789_v2 }
 0x650   :  { %v797_v5 = vmul.f32 %v792_v3, %v2449_v48 }
 0x651   :  { %v791_v6 = vpop.permute.xlu0 %790 }
 0x652   :  { %v793_v0 = vsel %vm102_vm6, %v789_v2, %v791_v6  ;;  %803 = vrot.lane.b32.xlu1 %v797_v5, %s2258_s19  ;;  %v799_v8 = vmul.f32 %v791_v6, %v2455_v54 }
 0x653   :  { %v798_v7 = vmul.f32 %v793_v0, %v2451_v49 }
 0x655   :  { %805 = vrot.lane.b32.xlu0 %v798_v7, %s2258_s19 }
 0x656   :  { %807 = vrot.lane.b32.xlu1 %v799_v8, %s2258_s19 }
 0x6c4   :  { %v804_v1 = vpop.permute.xlu1 %803 }
 0x6c5   :  { %814 = vst.msk [vmem:[#allocation2] sm:$0xff] %vm445_vm13, %v804_v1 }
 0x6c7   :  { %v806_v9 = vpop.permute.xlu0 %805 }
 0x6c8   :  { %v808_v10 = vpop.permute.xlu1 %807  ;;  %v809_v12 = vsel %vm39_vm11, %v804_v1, %v806_v9 }
 0x6c9   :  { %v810_v13 = vsel %vm39_vm11, %v806_v9, %v808_v10 }
 0x6ca   :  { %816 = vst.msk [vmem:[#allocation2 + $0x10] sm:$0xff] %vm448_vm14, %v810_v13 }
 0x6cc   :  { %v817_v14 = vld [vmem:[#allocation2] sm:$0xff] }
 0x6cd   :  { %831 = vrot.lane.b32.xlu0 %v817_v14, %s2245_s26  ;;  %823 = vrot.lane.b32.xlu1 %v817_v14, %s2246_s27 }
 0x6d1   :  { %847 = vrot.lane.b32.xlu0 %v817_v14, %s2249_s7  ;;  %839 = vrot.lane.b32.xlu1 %v817_v14, %s2247_s30  ;;  %v819_v15 = vld [vmem:[#allocation2 + $0x10] sm:$0xff] }
 0x6d2   :  { %v2022_v16 = vpack.i.bf16 %v819_v15, %v809_v12 }
 0x6d5   :  { %863 = vrot.lane.b32.xlu0 %v817_v14, %s2251_s9  ;;  %855 = vrot.lane.b32.xlu1 %v817_v14, %s2248_s6 }
 0x6d9   :  { %2023 = vrot.lane.b32.xlu1 %v2022_v16, %s2247_s30  ;;  %2013 = vrot.lane.b32.xlu0 %v2022_v16, %s2246_s27 }
 0x6dd   :  { %2033 = vrot.lane.b32.xlu1 %v2022_v16, %s2248_s6  ;;  %2018 = vrot.lane.b32.xlu0 %v2022_v16, %s2245_s26 }
 0x6e1   :  { %2043 = vrot.lane.b32.xlu1 %v2022_v16, %s2250_s8  ;;  %2028 = vrot.lane.b32.xlu0 %v2022_v16, %s2249_s7 }
 0x6e5   :  { %871 = vrot.lane.b32.xlu1 %v817_v14, %s2250_s8  ;;  %2038 = vrot.lane.b32.xlu0 %v2022_v16, %s2251_s9 }
 0x6e9   :  { %883 = vrot.lane.b32.xlu1 %v819_v15, %s2252_s10  ;;  %881 = vrot.lane.b32.xlu0 %v809_v12, %s2252_s10 }
 0x6ed   :  { %2048 = vrot.lane.b32.xlu1 %v2022_v16, %s2253_s11  ;;  %879 = vrot.lane.b32.xlu0 %v817_v14, %s2252_s10 }
 0x73f   :  { %v832_v18 = vpop.permute.xlu0 %831  ;;  %v824_v19 = vpop.permute.xlu1 %823 }
 0x743   :  { %v848_v20 = vpop.permute.xlu0 %847  ;;  %v840_v21 = vpop.permute.xlu1 %839 }
 0x747   :  { %v864_v22 = vpop.permute.xlu0 %863  ;;  %v856_v23 = vpop.permute.xlu1 %855 }
 0x74b   :  { %v2014_v24 = vpop.permute.xlu0 %2013  ;;  %v2024_v27 = vpop.permute.xlu1 %2023 }
 0x74c   :  { %v2016_v29 = vunpack.i.h.bf16 %v2014_v24  ;;  %v2015_v31 = vunpack.i.l.bf16 %v2014_v24  ;;  %v2026_v32 = vunpack.i.h.bf16 %v2024_v27  ;;  %v2025_v33 = vunpack.i.l.bf16 %v2024_v27 }
 0x74e   :  { %v830_v34 = vsel %vm57_vm0, %v2015_v31, %v2016_v29  ;;  %v829_v35 = vsel %vm57_vm0, %v824_v19, %v2015_v31  ;;  %v846_v40 = vsel %vm75_vm2, %v2025_v33, %v2026_v32  ;;  %v845_v60 = vsel %vm75_vm2, %v840_v21, %v2025_v33 }
 0x74f   :  { %v2052_v36 = vpack.i.bf16 %v2016_v29, %v830_v34  ;;  %v2057_v37 = vpack.i.bf16 %v829_v35, %v817_v14  ;;  %v2019_v38 = vpop.permute.xlu0 %2018  ;;  %v2034_v39 = vpop.permute.xlu1 %2033  ;;  %v2067_v44 = vpack.i.bf16 %v2026_v32, %v846_v40 }
 0x750   :  { %v2021_v41 = vunpack.i.h.bf16 %v2019_v38  ;;  %v2020_v42 = vunpack.i.l.bf16 %v2019_v38  ;;  %v2036_v51 = vunpack.i.h.bf16 %v2034_v39  ;;  %v2035_v53 = vunpack.i.l.bf16 %v2034_v39 }
 0x751   :  { %2053 = vrot.lane.b32.xlu0 %v2052_v36, %s2253_s11  ;;  %2058 = vrot.lane.b32.xlu1 %v2057_v37, %s2253_s11 }
 0x752   :  { %v838_v43 = vsel %vm66_vm1, %v2020_v42, %v2021_v41  ;;  %v837_v56 = vsel %vm66_vm1, %v832_v18, %v2020_v42  ;;  %v862_v63 = vsel %vm93_vm3, %v2035_v53, %v2036_v51  ;;  %v861_v8 = vsel %vm93_vm3, %v856_v23, %v2035_v53 }
 0x753   :  { %v2062_v46 = vpack.i.bf16 %v2021_v41, %v838_v43  ;;  %v2029_v55 = vpop.permute.xlu0 %2028  ;;  %v2044_v59 = vpop.permute.xlu1 %2043  ;;  %v2072_v62 = vpack.i.bf16 %v845_v60, %v837_v56  ;;  %v2082_v1 = vpack.i.bf16 %v2036_v51, %v862_v63 }
 0x754   :  { %v2031_v57 = vunpack.i.h.bf16 %v2029_v55  ;;  %v2030_v58 = vunpack.i.l.bf16 %v2029_v55  ;;  %v2046_v2 = vunpack.i.h.bf16 %v2044_v59  ;;  %v2045_v6 = vunpack.i.l.bf16 %v2044_v59 }
 0x755   :  { %2063 = vrot.lane.b32.xlu0 %v2062_v46, %s2253_s11  ;;  %2068 = vrot.lane.b32.xlu1 %v2067_v44, %s2253_s11 }
 0x756   :  { %v854_v61 = vsel %vm84_vm4, %v2030_v58, %v2031_v57  ;;  %v853_v5 = vsel %vm84_vm4, %v848_v20, %v2030_v58  ;;  %v878_v13 = vsel %vm111_vm5, %v2045_v6, %v2046_v2 }
 0x757   :  { %v2077_v25 = vpack.i.bf16 %v2031_v57, %v854_v61  ;;  %v2039_v3 = vpop.permute.xlu0 %2038  ;;  %v2087_v9 = vpack.i.bf16 %v861_v8, %v853_v5  ;;  %v872_v10 = vpop.permute.xlu1 %871  ;;  %v2097_v15 = vpack.i.bf16 %v2046_v2, %v878_v13 }
 0x758   :  { %v2041_v0 = vunpack.i.h.bf16 %v2039_v3  ;;  %v2040_v7 = vunpack.i.l.bf16 %v2039_v3  ;;  %v877_v20 = vsel %vm111_vm5, %v872_v10, %v2045_v6 }
 0x759   :  { %2078 = vrot.lane.b32.xlu1 %v2077_v25, %s2253_s11  ;;  %2073 = vrot.lane.b32.xlu0 %v2072_v62, %s2253_s11 }
 0x75a   :  { %v870_v14 = vsel %vm102_vm6, %v2040_v7, %v2041_v0  ;;  %v869_v18 = vsel %vm102_vm6, %v864_v22, %v2040_v7 }
 0x75b   :  { %v2092_v12 = vpack.i.bf16 %v2041_v0, %v870_v14  ;;  %v882_v16 = vpop.permute.xlu0 %881  ;;  %v884_v19 = vpop.permute.xlu1 %883  ;;  %v2102_v21 = vpack.i.bf16 %v877_v20, %v869_v18 }
 0x75c   :  { %v886_v23 = vsel %vm120_vm7, %v882_v16, %v884_v19 }
 0x75d   :  { %2088 = vrot.lane.b32.xlu1 %v2087_v9, %s2253_s11  ;;  %2083 = vrot.lane.b32.xlu0 %v2082_v1, %s2253_s11 }
 0x75f   :  { %v880_v24 = vpop.permute.xlu0 %879  ;;  %v2049_v22 = vpop.permute.xlu1 %2048 }
 0x760   :  { %v885_v27 = vsel %vm120_vm7, %v880_v24, %v882_v16  ;;  %v2051_v29 = vunpack.i.h.bf16 %v2049_v22  ;;  %v2050_v31 = vunpack.i.l.bf16 %v2049_v22 }
 0x761   :  { %2098 = vrot.lane.b32.xlu1 %v2097_v15, %s2253_s11  ;;  %2093 = vrot.lane.b32.xlu0 %v2092_v12, %s2253_s11 }
 0x762   :  { %v942_v38 = vsel %vm182_vm9, %v2050_v31, %v2051_v29 }
 0x765   :  { %937 = vrot.lane.b32.xlu1 %v886_v23, %s2253_s11  ;;  %2103 = vrot.lane.b32.xlu0 %v2102_v21, %s2253_s11 }
 0x769   :  { %935 = vrot.lane.b32.xlu1 %v885_v27, %s2253_s11  ;;  %939 = vrot.lane.b32.xlu0 %v884_v19, %s2253_s11 }
 0x7c3   :  { %v2054_v32 = vpop.permute.xlu0 %2053  ;;  %v2059_v33 = vpop.permute.xlu1 %2058 }
 0x7c4   :  { %v2056_v34 = vunpack.i.h.bf16 %v2054_v32  ;;  %v2055_v35 = vunpack.i.l.bf16 %v2054_v32  ;;  %v2061_v36 = vunpack.i.h.bf16 %v2059_v33  ;;  %v2060_v37 = vunpack.i.l.bf16 %v2059_v33 }
 0x7c6   :  { %v1767_v39 = vpack.c.bf16 %v2056_v34, %v2051_v29  ;;  %v943_v40 = vsel %vm182_vm9, %v2061_v36, %v2055_v35  ;;  %v941_v41 = vsel %vm182_vm9, %v2060_v37, %v2050_v31  ;;  %v944_v42 = vsel %vm182_vm9, %v2055_v35, %v2056_v34 }
 0x7c7   :  { %v1752_v43 = vpack.c.bf16 %v943_v40, %v941_v41  ;;  %v2064_v44 = vpop.permute.xlu0 %2063  ;;  %v2069_v46 = vpop.permute.xlu1 %2068  ;;  %v1750_v51 = vpack.c.bf16 %v944_v42, %v942_v38 }
 0x7c8   :  { %v2066_v53 = vunpack.i.h.bf16 %v2064_v44  ;;  %v2065_v55 = vunpack.i.l.bf16 %v2064_v44  ;;  %v2071_v56 = vunpack.i.h.bf16 %v2069_v46  ;;  %v2070_v57 = vunpack.i.l.bf16 %v2069_v46  ;;  %1768 = vmatpush3.bf16.msra.mxu1 %v1767_v39 }
 0x7c9   :  { %1751 = vmatprep.subr.bf16.mxu0 %v1750_v51  ;;  %1769 = vmatprep.subr.bf16.mxu1 %v2254_v4 }
 0x7ca   :  { %v1770_v58 = vpack.c.bf16 %v2071_v56, %v2066_v53  ;;  %1753 = vmatpush1.bf16.msra.mxu0 %v1752_v43  ;;  %v946_v59 = vsel %vm182_vm9, %v2065_v55, %v2066_v53  ;;  %v948_v60 = vsel %vm182_vm9, %v2070_v57, %v2071_v56 }
 0x7cb   :  { %v2079_v61 = vpop.permute.xlu1 %2078  ;;  %v2074_v62 = vpop.permute.xlu0 %2073  ;;  %v1754_v63 = vpack.c.bf16 %v948_v60, %v946_v59 }
 0x7cc   :  { %v2076_v25 = vunpack.i.h.bf16 %v2074_v62  ;;  %v2075_v2 = vunpack.i.l.bf16 %v2074_v62  ;;  %1771 = vmatpush3.bf16.msra.mxu1 %v1770_v58  ;;  %v2081_v3 = vunpack.i.h.bf16 %v2079_v61  ;;  %v2080_v5 = vunpack.i.l.bf16 %v2079_v61 }
 0x7cd   :  { %1755 = vmatprep.subr.bf16.mxu0 %v1754_v63  ;;  %1772 = vmatprep.subr.bf16.mxu1 %v2254_v4  ;;  %v1130_v62 = vstv %s2413_s17 }
 0x7ce   :  { %v947_v6 = vsel %vm182_vm9, %v2076_v25, %v2070_v57  ;;  %v945_v0 = vsel %vm182_vm9, %v2075_v2, %v2065_v55  ;;  %v950_v15 = vsel %vm182_vm9, %v2080_v5, %v2081_v3 }
 0x7cf   :  { %v1756_v7 = vpack.c.bf16 %v947_v6, %v945_v0  ;;  %v2089_v8 = vpop.permute.xlu1 %2088  ;;  %v2084_v1 = vpop.permute.xlu0 %2083  ;;  %v2680_v6 = vld [vmem:[%s2826_s1] sm:$0xff] }
 0x7d0   :  { %v2091_v9 = vunpack.i.h.bf16 %v2089_v8  ;;  %v2090_v10 = vunpack.i.l.bf16 %v2089_v8  ;;  %v2086_v13 = vunpack.i.h.bf16 %v2084_v1  ;;  %v2085_v14 = vunpack.i.l.bf16 %v2084_v1  ;;  %v2687_v1 = vld [vmem:[%s2826_s1 + $0x8] sm:$0xff] }
 0x7d1   :  { %1757 = vmatpush1.bf16.msra.mxu0 %v1756_v7 }
 0x7d2   :  { %v949_v12 = vsel %vm182_vm9, %v2090_v10, %v2080_v5  ;;  %v1773_v16 = vpack.c.bf16 %v2086_v13, %v2081_v3  ;;  %v951_v18 = vsel %vm182_vm9, %v2091_v9, %v2085_v14  ;;  %v952_v19 = vsel %vm182_vm9, %v2085_v14, %v2086_v13  ;;  %v2696_v14 = vld [vmem:[%s2826_s1 + $0x10] sm:$0xff] }
 0x7d3   :  { %v1760_v20 = vpack.c.bf16 %v951_v18, %v949_v12  ;;  %v2099_v21 = vpop.permute.xlu1 %2098  ;;  %v2094_v23 = vpop.permute.xlu0 %2093  ;;  %v1758_v24 = vpack.c.bf16 %v952_v19, %v950_v15 }
 0x7d4   :  { %v2101_v27 = vunpack.i.h.bf16 %v2099_v21  ;;  %v2100_v22 = vunpack.i.l.bf16 %v2099_v21  ;;  %v2096_v29 = vunpack.i.h.bf16 %v2094_v23  ;;  %v2095_v31 = vunpack.i.l.bf16 %v2094_v23  ;;  %1774 = vmatpush3.bf16.msra.mxu1 %v1773_v16 }
 0x7d5   :  { %1759 = vmatprep.subr.bf16.mxu0 %v1758_v24  ;;  %1775 = vmatprep.subr.bf16.mxu1 %v2254_v4 }
 0x7d6   :  { %v1776_v32 = vpack.c.bf16 %v2101_v27, %v2096_v29  ;;  %1761 = vmatpush1.bf16.msra.mxu0 %v1760_v20  ;;  %v954_v33 = vsel %vm182_vm9, %v2095_v31, %v2096_v29  ;;  %v956_v34 = vsel %vm182_vm9, %v2100_v22, %v2101_v27 }
 0x7d7   :  { %v938_v35 = vpop.permute.xlu1 %937  ;;  %v2104_v36 = vpop.permute.xlu0 %2103  ;;  %v1762_v37 = vpack.c.bf16 %v956_v34, %v954_v33 }
 0x7d8   :  { %v2106_v38 = vunpack.i.h.bf16 %v2104_v36  ;;  %v2105_v39 = vunpack.i.l.bf16 %v2104_v36  ;;  %1777 = vmatpush3.bf16.msra.mxu1 %v1776_v32 }
 0x7d9   :  { %1763 = vmatprep.subr.bf16.mxu0 %v1762_v37  ;;  %1668 = vmatprep.subr.mxu1 %v2255_v45 }
 0x7da   :  { %v955_v40 = vsel %vm182_vm9, %v2106_v38, %v2100_v22  ;;  %v953_v41 = vsel %vm182_vm9, %v2105_v39, %v2095_v31 }
 0x7db   :  { %v1764_v42 = vpack.c.bf16 %v955_v40, %v953_v41  ;;  %v940_v43 = vpop.permute.xlu0 %939  ;;  %v936_v46 = vpop.permute.xlu1 %935 }
 0x7dc   :  { %1669 = vmatpush3.msra.mxu1 %v940_v43  ;;  %v958_v44 = vsel %vm182_vm9, %v938_v35, %v940_v43  ;;  %v957_v51 = vsel %vm182_vm9, %v936_v46, %v938_v35 }
 0x7dd   :  { %1765 = vmatpush1.bf16.msra.mxu0 %v1764_v42  ;;  %1671 = vmatmul.mubr.msk.f32.vlgmr.msra.gmra.mrb[4].mxu1 %vm228_vm10, %v2398_v11 }
 0x7de   :  { %1002 = vmatprep.subr.mxu0 %v958_v44  ;;  %1794 = vmatprep.subr.bf16.mxu1 %v2254_v4 }
 0x7df   :  { %1691 = vmatprep.mubr.msk.f32.mxu1 %vm2256_vm8, %v2255_v45 }
 0x7e1   :  { %1003 = vmatpush1.msra.mxu0 %v957_v51 }
 0x7e2   :  { %1566 = vmatmul.mubr.msk.f32.vlgmr.msra.gmra.mrb[4].mxu0 %vm228_vm10, %v2398_v11 }
 0x7e3   :  { %1418 = vmatprep.mubr.f32.mxu0 %v2255_v45 }
 0x8b0   :  { %v1123_v53 = vpop.f32.mrb[4].mxu1 }
 0x8b1   :  { %v1672_v55 = vpop.f32.mrb[5].mxu1  ;;  %v1124_v57 = vadd.f32 %v1123_v53, %v2410_v17 }
 0x8b5   :  { %v1052_v56 = vpop.f32.mrb[4].mxu0 }
 0x8b6   :  { %v1053_v58 = vadd.f32 %v1052_v56, %v2410_v17  ;;  %v1054_v59 = vpop.f32.mrb[5].mxu0 }
 0x8b7   :  { %v1055_v60 = vadd.f32 %v1054_v59, %v2410_v17 }
 0x8b8   :  { %2214 = vtanh.f32 %v1053_v58 }
 0x8b9   :  { %2216 = vtanh.f32 %v1055_v60 }
 0x8ba   :  { %2218 = vtanh.f32 %v1124_v57 }
 0x8c2   :  { %v2664_v61 = vpop.eup %2214 }
 0x8c3   :  { %v2667_v63 = vpop.eup %2216  ;;  %v1131_v11 = vmul.f32 %v2664_v61, %v1130_v62 }
 0x8c4   :  { %v2670_v25 = vpop.eup %2218  ;;  %v1132_v2 = vmul.f32 %v2667_v63, %v1130_v62 }
 0x8c5   :  { %1137 = vrot.lane.b32.xlu0 %v1131_v11, %s2258_s19  ;;  %v1133_v3 = vmul.f32 %v2670_v25, %v1130_v62 }
 0x8c6   :  { %1139 = vrot.lane.b32.xlu1 %v1132_v2, %s2258_s19 }
 0x8c9   :  { %1141 = vrot.lane.b32.xlu0 %v1133_v3, %s2258_s19 }
 0x937   :  { %v1138_v5 = vpop.permute.xlu0 %1137 }
 0x938   :  { %v1148_v0 = vadd.f32 %v2680_v6, %v1138_v5  ;;  %v1140_v7 = vpop.permute.xlu1 %1139 }
 0x939   :  { %v1143_v8 = vsel %vm39_vm11, %v1138_v5, %v1140_v7 }
 0x93a   :  { %v1149_v9 = vadd.f32 %v2687_v1, %v1143_v8  ;;  %1154 = vrot.lane.b32.xlu1 %v1148_v0, %s2251_s9 }
 0x93b   :  { %v1142_v10 = vpop.permute.xlu0 %1141 }
 0x93c   :  { %v1144_v13 = vsel %vm39_vm11, %v1140_v7, %v1142_v10  ;;  %1156 = vrot.lane.b32.xlu0 %v1149_v9, %s2251_s9 }
 0x93d   :  { %v1150_v15 = vadd.f32 %v2696_v14, %v1144_v13 }
 0x93f   :  { %1158 = vrot.lane.b32.xlu1 %v1150_v15, %s2251_s9 }
 0x9ac   :  { %v1155_v12 = vpop.permute.xlu1 %1154 }
 0x9ae   :  { %v1157_v16 = vpop.permute.xlu0 %1156 }
 0x9af   :  { %v1160_v18 = vsel %vm102_vm6, %v1155_v12, %v1157_v16 }
 0x9b0   :  { %v1165_v19 = vmul.f32 %v1160_v18, %v2449_v48 }
 0x9b1   :  { %v1159_v20 = vpop.permute.xlu1 %1158 }
 0x9b2   :  { %v1161_v21 = vsel %vm102_vm6, %v1157_v16, %v1159_v20  ;;  %1171 = vrot.lane.b32.xlu0 %v1165_v19, %s2258_s19  ;;  %v1167_v24 = vmul.f32 %v1159_v20, %v2455_v54 }
 0x9b3   :  { %v1166_v23 = vmul.f32 %v1161_v21, %v2451_v49 }
 0x9b5   :  { %1173 = vrot.lane.b32.xlu1 %v1166_v23, %s2258_s19 }
 0x9b6   :  { %1175 = vrot.lane.b32.xlu0 %v1167_v24, %s2258_s19 }
 0xa24   :  { %v1172_v27 = vpop.permute.xlu0 %1171 }
 0xa25   :  { %1182 = vst.msk [vmem:[#allocation2] sm:$0xff] %vm445_vm13, %v1172_v27 }
 0xa27   :  { %v1174_v22 = vpop.permute.xlu1 %1173 }
 0xa28   :  { %v1177_v29 = vsel %vm39_vm11, %v1172_v27, %v1174_v22  ;;  %v1176_v31 = vpop.permute.xlu0 %1175 }
 0xa29   :  { %v1178_v32 = vsel %vm39_vm11, %v1174_v22, %v1176_v31 }
 0xa2a   :  { %1184 = vst.msk [vmem:[#allocation2 + $0x10] sm:$0xff] %vm448_vm14, %v1178_v32 }
 0xa2c   :  { %v1185_v33 = vld [vmem:[#allocation2] sm:$0xff] }
 0xa2d   :  { %1199 = vrot.lane.b32.xlu1 %v1185_v33, %s2245_s26  ;;  %1191 = vrot.lane.b32.xlu0 %v1185_v33, %s2246_s27 }
 0xa31   :  { %1215 = vrot.lane.b32.xlu1 %v1185_v33, %s2249_s7  ;;  %1207 = vrot.lane.b32.xlu0 %v1185_v33, %s2247_s30  ;;  %v1187_v34 = vld [vmem:[#allocation2 + $0x10] sm:$0xff] }
 0xa32   :  { %v2117_v35 = vpack.i.bf16 %v1187_v34, %v1177_v29 }
 0xa35   :  { %1231 = vrot.lane.b32.xlu1 %v1185_v33, %s2251_s9  ;;  %1223 = vrot.lane.b32.xlu0 %v1185_v33, %s2248_s6 }
 0xa39   :  { %2118 = vrot.lane.b32.xlu0 %v2117_v35, %s2247_s30  ;;  %2108 = vrot.lane.b32.xlu1 %v2117_v35, %s2246_s27 }
 0xa3d   :  { %2128 = vrot.lane.b32.xlu0 %v2117_v35, %s2248_s6  ;;  %2113 = vrot.lane.b32.xlu1 %v2117_v35, %s2245_s26 }
 0xa41   :  { %2138 = vrot.lane.b32.xlu0 %v2117_v35, %s2250_s8  ;;  %2123 = vrot.lane.b32.xlu1 %v2117_v35, %s2249_s7 }
 0xa45   :  { %1239 = vrot.lane.b32.xlu0 %v1185_v33, %s2250_s8  ;;  %2133 = vrot.lane.b32.xlu1 %v2117_v35, %s2251_s9 }
 0xa49   :  { %1251 = vrot.lane.b32.xlu0 %v1187_v34, %s2252_s10  ;;  %1249 = vrot.lane.b32.xlu1 %v1177_v29, %s2252_s10 }
 0xa4d   :  { %2143 = vrot.lane.b32.xlu0 %v2117_v35, %s2253_s11  ;;  %1247 = vrot.lane.b32.xlu1 %v1185_v33, %s2252_s10 }
 0xa9f   :  { %v1200_v36 = vpop.permute.xlu1 %1199  ;;  %v1192_v37 = vpop.permute.xlu0 %1191 }
 0xaa3   :  { %v1216_v38 = vpop.permute.xlu1 %1215  ;;  %v1208_v39 = vpop.permute.xlu0 %1207 }
 0xaa7   :  { %v1232_v40 = vpop.permute.xlu1 %1231  ;;  %v1224_v41 = vpop.permute.xlu0 %1223 }
 0xaab   :  { %v2109_v42 = vpop.permute.xlu1 %2108  ;;  %v2119_v43 = vpop.permute.xlu0 %2118 }
 0xaac   :  { %v2111_v44 = vunpack.i.h.bf16 %v2109_v42  ;;  %v2110_v46 = vunpack.i.l.bf16 %v2109_v42  ;;  %v2121_v51 = vunpack.i.h.bf16 %v2119_v43  ;;  %v2120_v53 = vunpack.i.l.bf16 %v2119_v43 }
 0xaae   :  { %v1198_v55 = vsel %vm57_vm0, %v2110_v46, %v2111_v44  ;;  %v1197_v56 = vsel %vm57_vm0, %v1192_v37, %v2110_v46  ;;  %v1214_v62 = vsel %vm75_vm2, %v2120_v53, %v2121_v51  ;;  %v1213_v16 = vsel %vm75_vm2, %v1208_v39, %v2120_v53 }
 0xaaf   :  { %v2147_v57 = vpack.i.bf16 %v2111_v44, %v1198_v55  ;;  %v2152_v58 = vpack.i.bf16 %v1197_v56, %v1185_v33  ;;  %v2114_v59 = vpop.permute.xlu1 %2113  ;;  %v2129_v60 = vpop.permute.xlu0 %2128  ;;  %v2162_v5 = vpack.i.bf16 %v2121_v51, %v1214_v62 }
 0xab0   :  { %v2116_v11 = vunpack.i.h.bf16 %v2114_v59  ;;  %v2115_v2 = vunpack.i.l.bf16 %v2114_v59  ;;  %v2131_v7 = vunpack.i.h.bf16 %v2129_v60  ;;  %v2130_v8 = vunpack.i.l.bf16 %v2129_v60 }
 0xab1   :  { %2148 = vrot.lane.b32.xlu1 %v2147_v57, %s2253_s11  ;;  %2153 = vrot.lane.b32.xlu0 %v2152_v58, %s2253_s11 }
 0xab2   :  { %v1206_v3 = vsel %vm66_vm1, %v2115_v2, %v2116_v11  ;;  %v1205_v10 = vsel %vm66_vm1, %v1200_v36, %v2115_v2  ;;  %v1230_v20 = vsel %vm93_vm3, %v2130_v8, %v2131_v7  ;;  %v1229_v32 = vsel %vm93_vm3, %v1224_v41, %v2130_v8 }
 0xab3   :  { %v2157_v0 = vpack.i.bf16 %v2116_v11, %v1206_v3  ;;  %v2124_v9 = vpop.permute.xlu1 %2123  ;;  %v2139_v12 = vpop.permute.xlu0 %2138  ;;  %v2167_v19 = vpack.i.bf16 %v1213_v16, %v1205_v10  ;;  %v2177_v33 = vpack.i.bf16 %v2131_v7, %v1230_v20 }
 0xab4   :  { %v2126_v13 = vunpack.i.h.bf16 %v2124_v9  ;;  %v2125_v15 = vunpack.i.l.bf16 %v2124_v9  ;;  %v2141_v23 = vunpack.i.h.bf16 %v2139_v12  ;;  %v2140_v22 = vunpack.i.l.bf16 %v2139_v12 }
 0xab5   :  { %2158 = vrot.lane.b32.xlu1 %v2157_v0, %s2253_s11  ;;  %2163 = vrot.lane.b32.xlu0 %v2162_v5, %s2253_s11 }
 0xab6   :  { %v1222_v18 = vsel %vm84_vm4, %v2125_v15, %v2126_v13  ;;  %v1221_v27 = vsel %vm84_vm4, %v1216_v38, %v2125_v15  ;;  %v1246_v36 = vsel %vm111_vm5, %v2140_v22, %v2141_v23 }
 0xab7   :  { %v2172_v21 = vpack.i.bf16 %v2126_v13, %v1222_v18  ;;  %v2134_v24 = vpop.permute.xlu1 %2133  ;;  %v2182_v34 = vpack.i.bf16 %v1229_v32, %v1221_v27  ;;  %v1240_v35 = vpop.permute.xlu0 %1239  ;;  %v2192_v38 = vpack.i.bf16 %v2141_v23, %v1246_v36 }
 0xab8   :  { %v2136_v29 = vunpack.i.h.bf16 %v2134_v24  ;;  %v2135_v31 = vunpack.i.l.bf16 %v2134_v24  ;;  %v1245_v41 = vsel %vm111_vm5, %v1240_v35, %v2140_v22 }
 0xab9   :  { %2173 = vrot.lane.b32.xlu0 %v2172_v21, %s2253_s11  ;;  %2168 = vrot.lane.b32.xlu1 %v2167_v19, %s2253_s11 }
 0xaba   :  { %v1238_v37 = vsel %vm102_vm6, %v2135_v31, %v2136_v29  ;;  %v1237_v43 = vsel %vm102_vm6, %v1232_v40, %v2135_v31 }
 0xabb   :  { %v2187_v39 = vpack.i.bf16 %v2136_v29, %v1238_v37  ;;  %v1250_v42 = vpop.permute.xlu1 %1249  ;;  %v1252_v44 = vpop.permute.xlu0 %1251  ;;  %v2197_v46 = vpack.i.bf16 %v1245_v41, %v1237_v43 }
 0xabc   :  { %v1254_v51 = vsel %vm120_vm7, %v1250_v42, %v1252_v44 }
 0xabd   :  { %2183 = vrot.lane.b32.xlu0 %v2182_v34, %s2253_s11  ;;  %2178 = vrot.lane.b32.xlu1 %v2177_v33, %s2253_s11 }
 0xabf   :  { %v1248_v53 = vpop.permute.xlu1 %1247  ;;  %v2144_v40 = vpop.permute.xlu0 %2143 }
 0xac0   :  { %v1253_v55 = vsel %vm120_vm7, %v1248_v53, %v1250_v42  ;;  %v2146_v56 = vunpack.i.h.bf16 %v2144_v40  ;;  %v2145_v57 = vunpack.i.l.bf16 %v2144_v40 }
 0xac1   :  { %2193 = vrot.lane.b32.xlu0 %v2192_v38, %s2253_s11  ;;  %2188 = vrot.lane.b32.xlu1 %v2187_v39, %s2253_s11 }
 0xac2   :  { %v1310_v3 = vsel %vm182_vm9, %v2145_v57, %v2146_v56 }
 0xac5   :  { %1305 = vrot.lane.b32.xlu0 %v1254_v51, %s2253_s11  ;;  %2198 = vrot.lane.b32.xlu1 %v2197_v46, %s2253_s11 }
 0xac9   :  { %1303 = vrot.lane.b32.xlu0 %v1253_v55, %s2253_s11  ;;  %1307 = vrot.lane.b32.xlu1 %v1252_v44, %s2253_s11 }
 0xb23   :  { %v2149_v58 = vpop.permute.xlu1 %2148  ;;  %v2154_v59 = vpop.permute.xlu0 %2153 }
 0xb24   :  { %v2151_v60 = vunpack.i.h.bf16 %v2149_v58  ;;  %v2150_v62 = vunpack.i.l.bf16 %v2149_v58  ;;  %v2156_v11 = vunpack.i.h.bf16 %v2154_v59  ;;  %v2155_v2 = vunpack.i.l.bf16 %v2154_v59 }
 0xb26   :  { %v1795_v5 = vpack.c.bf16 %v2151_v60, %v2146_v56  ;;  %v1311_v0 = vsel %vm182_vm9, %v2156_v11, %v2150_v62  ;;  %v1309_v7 = vsel %vm182_vm9, %v2155_v2, %v2145_v57  ;;  %v1312_v8 = vsel %vm182_vm9, %v2150_v62, %v2151_v60 }
 0xb27   :  { %v1780_v9 = vpack.c.bf16 %v1311_v0, %v1309_v7  ;;  %v2159_v10 = vpop.permute.xlu1 %2158  ;;  %v2164_v13 = vpop.permute.xlu0 %2163  ;;  %v1778_v15 = vpack.c.bf16 %v1312_v8, %v1310_v3 }
 0xb28   :  { %v2161_v12 = vunpack.i.h.bf16 %v2159_v10  ;;  %v2160_v16 = vunpack.i.l.bf16 %v2159_v10  ;;  %v2166_v18 = vunpack.i.h.bf16 %v2164_v13  ;;  %v2165_v19 = vunpack.i.l.bf16 %v2164_v13  ;;  %1796 = vmatpush3.bf16.msra.mxu1 %v1795_v5 }
 0xb29   :  { %1779 = vmatprep.subr.bf16.mxu0 %v1778_v15  ;;  %1797 = vmatprep.subr.bf16.mxu1 %v2254_v4 }
 0xb2a   :  { %v1798_v20 = vpack.c.bf16 %v2166_v18, %v2161_v12  ;;  %1781 = vmatpush1.bf16.msra.mxu0 %v1780_v9  ;;  %v1314_v21 = vsel %vm182_vm9, %v2160_v16, %v2161_v12  ;;  %v1316_v23 = vsel %vm182_vm9, %v2165_v19, %v2166_v18 }
 0xb2b   :  { %v2174_v24 = vpop.permute.xlu0 %2173  ;;  %v2169_v27 = vpop.permute.xlu1 %2168  ;;  %v1782_v22 = vpack.c.bf16 %v1316_v23, %v1314_v21 }
 0xb2c   :  { %v2171_v29 = vunpack.i.h.bf16 %v2169_v27  ;;  %v2170_v31 = vunpack.i.l.bf16 %v2169_v27  ;;  %1799 = vmatpush3.bf16.msra.mxu1 %v1798_v20  ;;  %v2176_v32 = vunpack.i.h.bf16 %v2174_v24  ;;  %v2175_v33 = vunpack.i.l.bf16 %v2174_v24 }
 0xb2d   :  { %1783 = vmatprep.subr.bf16.mxu0 %v1782_v22  ;;  %1800 = vmatprep.subr.bf16.mxu1 %v2254_v4  ;;  %v1503_v24 = vadd.f32 %v2670_v25, %v2554_v52 }
 0xb2e   :  { %v1315_v34 = vsel %vm182_vm9, %v2171_v29, %v2165_v19  ;;  %v1313_v35 = vsel %vm182_vm9, %v2170_v31, %v2160_v16  ;;  %v1318_v41 = vsel %vm182_vm9, %v2175_v33, %v2176_v32  ;;  %v2229_v19 = vld [vmem:[%s2827_s2] sm:$0xff]  ;;  %s1500_s2 = smul.f32 0.16666667, %s2413_s17 }
 0xb2f   :  { %v1784_v36 = vpack.c.bf16 %v1315_v34, %v1313_v35  ;;  %v2184_v37 = vpop.permute.xlu0 %2183  ;;  %v2179_v38 = vpop.permute.xlu1 %2178  ;;  %v1502_v34 = vadd.f32 %v2667_v63, %v2550_v50 }
 0xb30   :  { %v2186_v39 = vunpack.i.h.bf16 %v2184_v37  ;;  %v2185_v42 = vunpack.i.l.bf16 %v2184_v37  ;;  %v2181_v43 = vunpack.i.h.bf16 %v2179_v38  ;;  %v2180_v44 = vunpack.i.l.bf16 %v2179_v38 }
 0xb31   :  { %1785 = vmatpush1.bf16.msra.mxu0 %v1784_v36  ;;  %v1505_v52 = vmul.f32 2.0, %v1502_v34 }
 0xb32   :  { %v1317_v46 = vsel %vm182_vm9, %v2185_v42, %v2175_v33  ;;  %v1801_v51 = vpack.c.bf16 %v2181_v43, %v2176_v32  ;;  %v1319_v53 = vsel %vm182_vm9, %v2186_v39, %v2180_v44  ;;  %v1320_v55 = vsel %vm182_vm9, %v2180_v44, %v2181_v43 }
 0xb33   :  { %v1788_v40 = vpack.c.bf16 %v1319_v53, %v1317_v46  ;;  %v2194_v56 = vpop.permute.xlu0 %2193  ;;  %v2189_v57 = vpop.permute.xlu1 %2188  ;;  %v1786_v58 = vpack.c.bf16 %v1320_v55, %v1318_v41  ;;  %v1506_v32 = vmul.f32 2.0, %v1503_v24  ;;  %v1501_v33 = vadd.f32 %v2664_v61, %v2548_v47 }
 0xb34   :  { %v2196_v59 = vunpack.i.h.bf16 %v2194_v56  ;;  %v2195_v60 = vunpack.i.l.bf16 %v2194_v56  ;;  %v2191_v62 = vunpack.i.h.bf16 %v2189_v57  ;;  %v2190_v11 = vunpack.i.l.bf16 %v2189_v57  ;;  %1802 = vmatpush3.bf16.msra.mxu1 %v1801_v51 }
 0xb35   :  { %1787 = vmatprep.subr.bf16.mxu0 %v1786_v58  ;;  %1803 = vmatprep.subr.bf16.mxu1 %v2254_v4  ;;  %v1509_v35 = vadd.f32 %v2422_v26, %v1506_v32  ;;  %v1504_v37 = vmul.f32 2.0, %v1501_v33  ;;  %v1513_v44 = vstv %s1500_s2 }
 0xb36   :  { %v1804_v2 = vpack.c.bf16 %v2196_v59, %v2191_v62  ;;  %1789 = vmatpush1.bf16.msra.mxu0 %v1788_v40  ;;  %v1322_v3 = vsel %vm182_vm9, %v2190_v11, %v2191_v62  ;;  %v1324_v5 = vsel %vm182_vm9, %v2195_v60, %v2196_v59 }
 0xb37   :  { %v1306_v0 = vpop.permute.xlu0 %1305  ;;  %v2199_v7 = vpop.permute.xlu1 %2198  ;;  %v1790_v8 = vpack.c.bf16 %v1324_v5, %v1322_v3  ;;  %v1507_v38 = vadd.f32 %v2427_v28, %v1504_v37 }
 0xb38   :  { %v2201_v9 = vunpack.i.h.bf16 %v2199_v7  ;;  %v2200_v10 = vunpack.i.l.bf16 %v2199_v7  ;;  %1805 = vmatpush3.bf16.msra.mxu1 %v1804_v2 }
 0xb39   :  { %1791 = vmatprep.subr.bf16.mxu0 %v1790_v8  ;;  %1689 = vmatprep.subr.mxu1 %v2255_v45 }
 0xb3a   :  { %v1323_v13 = vsel %vm182_vm9, %v2201_v9, %v2195_v60  ;;  %v1321_v15 = vsel %vm182_vm9, %v2200_v10, %v2190_v11 }
 0xb3b   :  { %v1792_v4 = vpack.c.bf16 %v1323_v13, %v1321_v15  ;;  %v1308_v12 = vpop.permute.xlu1 %1307  ;;  %v1304_v18 = vpop.permute.xlu0 %1303 }
 0xb3c   :  { %1690 = vmatpush3.msra.mxu1 %v1308_v12  ;;  %v1326_v16 = vsel %vm182_vm9, %v1306_v0, %v1308_v12  ;;  %v1325_v45 = vsel %vm182_vm9, %v1304_v18, %v1306_v0 }
 0xb3d   :  { %1793 = vmatpush1.bf16.msra.mxu0 %v1792_v4  ;;  %1692 = vmatmul.mubr.msk.f32.vlgmr.msra.gmra.mrb[6].mxu1 %vm228_vm10, %v2229_v19 }
 0xb3e   :  { %1370 = vmatprep.subr.mxu0 %v1326_v16 }
 0xb41   :  { %1371 = vmatpush1.msra.mxu0 %v1325_v45 }
 0xb42   :  { %1568 = vmatmul.mubr.msk.f32.vlgmr.msra.gmra.mrb[6].mxu0 %vm228_vm10, %v2229_v19 }
 0xc10   :  { %v1491_v20 = vpop.f32.mrb[6].mxu1 }
 0xc11   :  { %v1492_v21 = vadd.f32 %v1491_v20, %v2410_v17  ;;  %v1693_v23 = vpop.f32.mrb[7].mxu1 }
 0xc13   :  { %2220 = vtanh.f32 %v1492_v21 }
 0xc15   :  { %v1420_v27 = vpop.f32.mrb[6].mxu0 }
 0xc16   :  { %v1421_v22 = vadd.f32 %v1420_v27, %v2410_v17  ;;  %v1422_v29 = vpop.f32.mrb[7].mxu0 }
 0xc17   :  { %v1423_v31 = vadd.f32 %v1422_v29, %v2410_v17  ;;  %v1508_v17 = vadd.f32 %v2431_v30, %v1505_v52 }
 0xc18   :  { %2222 = vtanh.f32 %v1421_v22 }
 0xc19   :  { %2224 = vtanh.f32 %v1423_v31 }
 0xc1d   :  { %v2221_v36 = vpop.eup %2220 }
 0xc1e   :  { %v1512_v25 = vadd.f32 %v2221_v36, %v1509_v35 }
 0xc20   :  { %v1516_v26 = vmul.f32 %v1513_v44, %v1512_v25 }
 0xc22   :  { %v2223_v39 = vpop.eup %2222 }
 0xc23   :  { %v2225_v42 = vpop.eup %2224  ;;  %v1510_v43 = vadd.f32 %v2223_v39, %v1507_v38 }
 0xc24   :  { %v1511_v47 = vadd.f32 %v2225_v42, %v1508_v17 }
 0xc25   :  { %v1514_v61 = vmul.f32 %v1513_v44, %v1510_v43 }
 0xc26   :  { %v1515_v41 = vmul.f32 %v1513_v44, %v1511_v47 }
 0xc27   :  { %1520 = vrot.lane.b32.xlu1 %v1514_v61, %s2258_s19 }
 0xc28   :  { %1522 = vrot.lane.b32.xlu0 %v1515_v41, %s2258_s19 }
 0xc2b   :  { %1524 = vrot.lane.b32.xlu1 %v1516_v26, %s2258_s19 }
 0xc99   :  { %v1521_v50 = vpop.permute.xlu1 %1520 }
 0xc9a   :  { %v1531_v63 = vadd.f32 %v2680_v6, %v1521_v50  ;;  %v1523_v28 = vpop.permute.xlu0 %1522 }
 0xc9b   :  { %v1526_v46 = vsel %vm39_vm11, %v1521_v50, %v1523_v28 }
 0xc9c   :  { %v1532_v30 = vadd.f32 %v2687_v1, %v1526_v46  ;;  %1537 = vrot.lane.b32.xlu0 %v1531_v63, %s2251_s9 }
 0xc9d   :  { %v1525_v51 = vpop.permute.xlu1 %1524 }
 0xc9e   :  { %v1527_v53 = vsel %vm39_vm11, %v1523_v28, %v1525_v51  ;;  %1539 = vrot.lane.b32.xlu1 %v1532_v30, %s2251_s9 }
 0xc9f   :  { %v1533_v55 = vadd.f32 %v2696_v14, %v1527_v53 }
 0xca1   :  { %1541 = vrot.lane.b32.xlu0 %v1533_v55, %s2251_s9 }
 0xd0e   :  { %v1538_v40 = vpop.permute.xlu0 %1537 }
 0xd10   :  { %v1540_v56 = vpop.permute.xlu1 %1539 }
 0xd11   :  { %v1543_v6 = vsel %vm102_vm6, %v1538_v40, %v1540_v56 }
 0xd12   :  { %v1548_v57 = vmul.f32 %v1543_v6, %v2449_v48 }
 0xd13   :  { %v1542_v58 = vpop.permute.xlu0 %1541 }
 0xd14   :  { %1553 = vst [vmem:[%s2830_s5] sm:$0xff] %v1548_v57  ;;  %v1544_v1 = vsel %vm102_vm6, %v1540_v56, %v1542_v58  ;;  %v1550_v59 = vmul.f32 %v1542_v58, %v2455_v54 }
 0xd15   :  { %v1549_v14 = vmul.f32 %v1544_v1, %v2451_v49 }
 0xd16   :  { %v1552_v60 = vsel %vm1551_vm15, %v1550_v59, 0.0 }
 0xd17   :  { %1554 = vst [vmem:[%s2830_s5 + $0x8] sm:$0xff] %v1549_v14  ;;  %1555 = vst [vmem:[%s2830_s5 + $0x10] sm:$0xff] %v1552_v60 }
 0xd18   :  { %1560 = vsyncpa [#allocation4], 1 }

</bundles_post_ra>
